<compile_context>
chip_gen: v5e
topology: v5e:2x2
jax: 0.10.0
libtpu: 0.0.40
codegen_flags: <defaults>
</compile_context>

<pallas_src>
import math
from functools import partial

import jax
import jax.numpy as jnp
import numpy as np
from jax import lax
from jax.experimental import pallas as pl
from jax.experimental.pallas import tpu as pltpu

# ---- S4D default hyper-parameters (match the PyTorch module defaults) ----
K_S = (3, 3)                 # spatial kernel (kernel_size[2:])
K_N, K_T = 3, 3              # number of temporal branches / temporal kernel size
DIL = 8                      # temporal anchor dilation ("dilation" arg)
TAU, ALPHA, BETA = 1, 2, 4
D_LIST = [ALPHA * TAU, TAU, BETA * TAU]          # per-branch dilations [2, 1, 4]
PAD_F = (K_N // 2) * DIL                         # front time pad = 8
PAD_B = PAD_F + (K_T - 1) * D_LIST[-1]           # back time pad = 16
# tap offsets into the time-padded intermediate: k*DIL + j*d_k
TAP_OFFSETS = tuple(k * DIL + j * D_LIST[k] for k in range(K_N) for j in range(K_T))
N_TAPS = len(TAP_OFFSETS)                        # 9


# ----------------------------- fused Pallas kernel ------------------------
def _make_s4d_kernel(T, H):
    TH = T * H
    PF = PAD_F * H            # first row of the "real" frames inside the scratch

    def kernel(x_ref, wsp_ref, wtb_ref, b_ref, o_ref, y_scr):
        # x_ref  : (1, T*H, W*Cin)          streamed input block (one batch elem)
        # wsp_ref: (3, W*Cin, W*Cout)       spatial weights, width taps pre-folded
        # wtb_ref: (9, W*Cout, W*Cout)      block-diagonal temporal tap weights
        # b_ref  : (1, W*Cout)              summed Conv3d biases, tiled over w
        # o_ref  : (1, T*H, W*Cout)         output block
        # y_scr  : ((T+24)*H, W*Cout) f32   time-padded spatial-conv intermediate
        y_scr[...] = jnp.zeros_like(y_scr)          # zero incl. temporal padding
        x = x_ref[0]                                 # (T*H, W*Cin)
        h_idx = lax.broadcasted_iota(jnp.int32, (TH, 1), 0) % H

        # ---- stage 1: 3x3 spatial conv = 3 row-shifted MXU matmuls ----------
        p_mid = jnp.dot(x, wsp_ref[1], preferred_element_type=jnp.float32)  # dy=1
        p_top = jnp.dot(x, wsp_ref[0], preferred_element_type=jnp.float32)  # dy=0
        p_bot = jnp.dot(x, wsp_ref[2], preferred_element_type=jnp.float32)  # dy=2
        # kill contributions that would leak across frame boundaries (H padding)
        p_top = jnp.where(h_idx == H - 1, 0.0, p_top)   # goes to output row r+1
        p_bot = jnp.where(h_idx == 0, 0.0, p_bot)       # goes to output row r-1
        y_scr[PF:PF + TH, :] = p_mid
        y_scr[PF + 1:PF + 1 + TH, :] += p_top
        y_scr[PF - 1:PF - 1 + TH, :] += p_bot

        # ---- stage 2: 9 dilated temporal taps read from the VMEM scratch ----
        acc = None
        for i, off in enumerate(TAP_OFFSETS):
            r0 = off * H
            p = jnp.dot(y_scr[r0:r0 + TH, :], wtb_ref[i],
                        preferred_element_type=jnp.float32)
            acc = p if acc is None else acc + p
        o_ref[0] = (acc + b_ref[...]).astype(o_ref.dtype)

    return kernel


# ----------------------------- S4D forward --------------------------------
def s4d_forward(x, w_s, w_t_list, b_t_list, *, compute_dtype=jnp.float32):
    """x: (B, Cin, T, H, W) f32 -> (B, Cout, T, H, W) f32."""
    B, Cin, T, H, W = x.shape
    Cout, _, KH, KW = w_s.shape
    assert (KH, KW) == K_S, "kernel assumes the module-default 3x3 spatial kernel"

    TH, WCi, WCo = T * H, W * Cin, W * Cout
    n_pad_t = T + PAD_F + PAD_B

    # channels-last, row-flattened input: X2[b, t*H + h, w*Cin + ci]
    x2 = jnp.transpose(x, (0, 2, 3, 4, 1)).reshape(B, TH, WCi).astype(compute_dtype)

    # stage-1 weights: fold the 3 width taps (and W zero-padding) into one
    # banded (W*Cin, W*Cout) matrix per kernel row dy.
    wsp = []
    for dy in range(KH):
        m = None
        for dx in range(KW):
            shift = np.eye(W, k=1 - dx, dtype=np.float32)   # source col w' = w+dx-1
            blk = jnp.kron(shift, w_s[:, :, dy, dx].T)       # (W*Cin, W*Cout)
            m = blk if m is None else m + blk
        wsp.append(m)
    wsp = jnp.stack(wsp).astype(compute_dtype)               # (3, W*Cin, W*Cout)

    # stage-2 weights: per-tap block-diagonal (W*Cout, W*Cout) matrices
    eye_w = np.eye(W, dtype=np.float32)
    wtb = jnp.stack([jnp.kron(eye_w, w_t_list[k][:, :, j, 0, 0].T)
                     for k in range(K_N) for j in range(K_T)]).astype(compute_dtype)
    bias_row = jnp.tile(sum(b_t_list).astype(jnp.float32), W).reshape(1, WCo)

    out2 = pl.pallas_call(
        _make_s4d_kernel(T, H),
        out_shape=jax.ShapeDtypeStruct((B, TH, WCo), jnp.float32),
        grid_spec=pltpu.PrefetchScalarGridSpec(
            num_scalar_prefetch=0,
            grid=(B,),
            in_specs=[
                pl.BlockSpec((1, TH, WCi), lambda b: (b, 0, 0)),
                pl.BlockSpec((KH, WCi, WCo), lambda b: (0, 0, 0)),
                pl.BlockSpec((N_TAPS, WCo, WCo), lambda b: (0, 0, 0)),
                pl.BlockSpec((1, WCo), lambda b: (0, 0)),
            ],
            out_specs=pl.BlockSpec((1, TH, WCo), lambda b: (b, 0, 0)),
            scratch_shapes=[pltpu.VMEM((n_pad_t * H, WCo), jnp.float32)],
        ),
        compiler_params=pltpu.CompilerParams(
            dimension_semantics=("parallel",),          # both TCs on v7x
            vmem_limit_bytes=32 * 1024 * 1024,          # explicit budget (v7x: 64 MiB phys)
        ),
    )(x2, wsp, wtb, bias_row)

    out = out2.reshape(B, T, H, W, Cout)
    return jnp.transpose(out, (0, 4, 1, 2, 3))           # back to (B, Cout, T, H, W)


# ------------------------- pure-JAX reference ------------------------------
def s4d_reference(x, w_s, w_t_list, b_t_list):
    B, Cin, T, H, W = x.shape
    Cout = w_s.shape[0]
    xf = jnp.transpose(x, (0, 2, 1, 3, 4)).reshape(B * T, Cin, H, W)
    ys = lax.conv_general_dilated(
        xf, w_s, (1, 1), ((K_S[0] // 2, K_S[0] // 2), (K_S[1] // 2, K_S[1] // 2)),
        dimension_numbers=("NCHW", "OIHW", "NCHW"))
    y = jnp.transpose(ys.reshape(B, T, Cout, H, W), (0, 2, 1, 3, 4))
    y_pad = jnp.pad(y, ((0, 0), (0, 0), (PAD_F, PAD_B), (0, 0), (0, 0)))
    out = None
    for k in range(K_N):
        start = k * DIL
        stop = (y_pad.shape[2] - DIL * (K_N - 1 - k)
                - (K_T - 1) * D_LIST[-1] + (K_T - 1) * D_LIST[k])
        temp = y_pad[:, :, start:stop]
        xo = lax.conv_general_dilated(
            temp, w_t_list[k], (1, 1, 1), ((0, 0), (0, 0), (0, 0)),
            rhs_dilation=(D_LIST[k], 1, 1),
            dimension_numbers=("NCDHW", "OIDHW", "NCDHW"))
        xo = xo + b_t_list[k][None, :, None, None, None]
        out = xo if out is None else out + xo
    return out


if __name__ == "__main__":
    B, Cin, Cout, T, H, W = 2, 4, 8, 8, 8, 8
    key = jax.random.PRNGKey(0)
    keys = jax.random.split(key, 8)

    x = jax.random.normal(keys[0], (B, Cin, T, H, W), jnp.float32)
    w_s = jax.random.normal(keys[1], (Cout, Cin, K_S[0], K_S[1]),
                            jnp.float32) / math.sqrt(Cin * K_S[0] * K_S[1])
    w_t_list = [jax.random.normal(keys[2 + k], (Cout, Cout, K_T, 1, 1),
                                  jnp.float32) / math.sqrt(Cout * K_T)
                for k in range(K_N)]
    b_t_list = [jax.random.normal(keys[5 + k], (Cout,), jnp.float32) * 0.1
                for k in range(K_N)]

    ref = jax.block_until_ready(s4d_reference(x, w_s, w_t_list, b_t_list))

    # f32 path: tight correctness check
    fwd_f32 = jax.jit(partial(s4d_forward, compute_dtype=jnp.float32))
    out_f32 = jax.block_until_ready(fwd_f32(x, w_s, w_t_list, b_t_list))
    np.testing.assert_allclose(np.asarray(out_f32), np.asarray(ref),
                               rtol=1e-4, atol=1e-4)

    # bf16 streamed operands (half the HBM traffic), f32 accumulation
    fwd_bf16 = jax.jit(partial(s4d_forward, compute_dtype=jnp.bfloat16))
    out_bf16 = jax.block_until_ready(fwd_bf16(x, w_s, w_t_list, b_t_list))
    np.testing.assert_allclose(np.asarray(out_bf16), np.asarray(ref),
                               rtol=5e-2, atol=5e-2)

    print("KERNEL_OK")
</pallas_src>

<mosaic_0001>
module attributes {stable_mosaic.version = 11 : i64} {
  func.func @kernel(%arg0: i32, %arg1: memref<1x64x32xf32, #tpu.memory_space<vmem>>, %arg2: memref<3x32x64xf32, #tpu.memory_space<vmem>>, %arg3: memref<9x64x64xf32, #tpu.memory_space<vmem>>, %arg4: memref<1x64xf32, #tpu.memory_space<vmem>>, %arg5: memref<1x64x64xf32, #tpu.memory_space<vmem>>, %arg6: memref<256x64xf32, #tpu.memory_space<vmem>>) attributes {dimension_semantics = [#tpu.dimension_semantics<parallel>], iteration_bounds = array<i64: 2>, scalar_prefetch = 0 : i64, scratch_operands = 1 : i64, tpu.core_type = #tpu.core_type<tc>, window_params = [{transform_indices = @transform_0, window_bounds = array<i64: 1, 64, 32>}, {pipeline_mode = #tpu.pipeline_mode<synchronous>, transform_indices = @transform_1, window_bounds = array<i64: 3, 32, 64>}, {pipeline_mode = #tpu.pipeline_mode<synchronous>, transform_indices = @transform_2, window_bounds = array<i64: 9, 64, 64>}, {pipeline_mode = #tpu.pipeline_mode<synchronous>, transform_indices = @transform_3, window_bounds = array<i64: 1, 64>}, {transform_indices = @transform_4, window_bounds = array<i64: 1, 64, 64>}]} {
    %cst = arith.constant 0.000000e+00 : f32
    %0 = vector.broadcast %cst : f32 to vector<256x64xf32>
    %c0 = arith.constant 0 : index
    %c0_0 = arith.constant 0 : index
    %1 = vector.load %arg6[%c0, %c0_0] : memref<256x64xf32, #tpu.memory_space<vmem>>, vector<256x64xf32>
    tpu.vector_store %arg6[%c0, %c0_0], %0 {strides = array<i32>} : memref<256x64xf32, #tpu.memory_space<vmem>>, vector<256x64xf32>,
    %c0_1 = arith.constant 0 : index
    %c0_2 = arith.constant 0 : index
    %c0_3 = arith.constant 0 : index
    %2 = vector.load %arg1[%c0_1, %c0_2, %c0_3] : memref<1x64x32xf32, #tpu.memory_space<vmem>>, vector<1x64x32xf32>
    %3 = vector.shape_cast %2 : vector<1x64x32xf32> to vector<64x32xf32>
    %4 = tpu.iota {dimensions = array<i32: 0>} : vector<64x1xi32>
    %c8_i32 = arith.constant 8 : i32
    %c0_i32 = arith.constant 0 : i32
    %5 = arith.cmpi eq, %c8_i32, %c0_i32 : i32
    %c1_i32 = arith.constant 1 : i32
    %6 = arith.select %5, %c1_i32, %c8_i32 : i32
    %7 = vector.broadcast %6 : i32 to vector<64x1xi32>
    %8 = arith.remsi %4, %7 : vector<64x1xi32>
    %c0_i32_4 = arith.constant 0 : i32
    %9 = vector.broadcast %c0_i32_4 : i32 to vector<64x1xi32>
    %10 = arith.cmpi ne, %8, %9 : vector<64x1xi32>
    %c0_i32_5 = arith.constant 0 : i32
    %11 = vector.broadcast %c0_i32_5 : i32 to vector<64x1xi32>
    %12 = arith.cmpi slt, %8, %11 : vector<64x1xi32>
    %c0_i32_6 = arith.constant 0 : i32
    %13 = arith.cmpi slt, %6, %c0_i32_6 : i32
    %14 = vector.broadcast %13 : i1 to vector<64x1xi1>
    %15 = vector.broadcast %14 : vector<64x1xi1> to vector<64x1xi1>
    %16 = arith.xori %12, %15 : vector<64x1xi1>
    %17 = arith.andi %16, %10 : vector<64x1xi1>
    %18 = vector.broadcast %6 : i32 to vector<64x1xi32>
    %19 = arith.addi %8, %18 : vector<64x1xi32>
    %20 = arith.select %17, %19, %8 : vector<64x1xi1>, vector<64x1xi32>
    %c1 = arith.constant 1 : index
    %c0_7 = arith.constant 0 : index
    %c0_8 = arith.constant 0 : index
    %21 = vector.load %arg2[%c1, %c0_7, %c0_8] : memref<3x32x64xf32, #tpu.memory_space<vmem>>, vector<1x32x64xf32>
    %22 = vector.shape_cast %21 : vector<1x32x64xf32> to vector<32x64xf32>
    %cst_9 = arith.constant dense<0.000000e+00> : vector<64x64xf32>
    %23 = tpu.matmul %3, %22, %cst_9 {dimension_numbers = #tpu.dot_dimension_numbers<[1], [0], [0], [1], [0, 0, 1, 1], [], []>} : vector<64x32xf32>, vector<32x64xf32>, vector<64x64xf32> -> vector<64x64xf32>
    %c0_10 = arith.constant 0 : index
    %c0_11 = arith.constant 0 : index
    %c0_12 = arith.constant 0 : index
    %24 = vector.load %arg2[%c0_10, %c0_11, %c0_12] : memref<3x32x64xf32, #tpu.memory_space<vmem>>, vector<1x32x64xf32>
    %25 = vector.shape_cast %24 : vector<1x32x64xf32> to vector<32x64xf32>
    %cst_13 = arith.constant dense<0.000000e+00> : vector<64x64xf32>
    %26 = tpu.matmul %3, %25, %cst_13 {dimension_numbers = #tpu.dot_dimension_numbers<[1], [0], [0], [1], [0, 0, 1, 1], [], []>} : vector<64x32xf32>, vector<32x64xf32>, vector<64x64xf32> -> vector<64x64xf32>
    %c2 = arith.constant 2 : index
    %c0_14 = arith.constant 0 : index
    %c0_15 = arith.constant 0 : index
    %27 = vector.load %arg2[%c2, %c0_14, %c0_15] : memref<3x32x64xf32, #tpu.memory_space<vmem>>, vector<1x32x64xf32>
    %28 = vector.shape_cast %27 : vector<1x32x64xf32> to vector<32x64xf32>
    %cst_16 = arith.constant dense<0.000000e+00> : vector<64x64xf32>
    %29 = tpu.matmul %3, %28, %cst_16 {dimension_numbers = #tpu.dot_dimension_numbers<[1], [0], [0], [1], [0, 0, 1, 1], [], []>} : vector<64x32xf32>, vector<32x64xf32>, vector<64x64xf32> -> vector<64x64xf32>
    %c7_i32 = arith.constant 7 : i32
    %30 = vector.broadcast %c7_i32 : i32 to vector<64x1xi32>
    %31 = arith.cmpi eq, %20, %30 : vector<64x1xi32>
    %cst_17 = arith.constant 0.000000e+00 : f32
    %32 = vector.shape_cast %31 : vector<64x1xi1> to vector<64x1xi1>
    %33 = vector.broadcast %32 : vector<64x1xi1> to vector<64x64xi1>
    %34 = vector.broadcast %cst_17 : f32 to vector<64x64xf32>
    %35 = arith.select %33, %34, %26 : vector<64x64xi1>, vector<64x64xf32>
    %c0_i32_18 = arith.constant 0 : i32
    %36 = vector.broadcast %c0_i32_18 : i32 to vector<64x1xi32>
    %37 = arith.cmpi eq, %20, %36 : vector<64x1xi32>
    %cst_19 = arith.constant 0.000000e+00 : f32
    %38 = vector.shape_cast %37 : vector<64x1xi1> to vector<64x1xi1>
    %39 = vector.broadcast %38 : vector<64x1xi1> to vector<64x64xi1>
    %40 = vector.broadcast %cst_19 : f32 to vector<64x64xf32>
    %41 = arith.select %39, %40, %29 : vector<64x64xi1>, vector<64x64xf32>
    %c64 = arith.constant 64 : index
    %c0_20 = arith.constant 0 : index
    %42 = vector.load %arg6[%c64, %c0_20] : memref<256x64xf32, #tpu.memory_space<vmem>>, vector<64x64xf32>
    tpu.vector_store %arg6[%c64, %c0_20], %23 {strides = array<i32>} : memref<256x64xf32, #tpu.memory_space<vmem>>, vector<64x64xf32>,
    %c65 = arith.constant 65 : index
    %c0_21 = arith.constant 0 : index
    %43 = vector.load %arg6[%c65, %c0_21] : memref<256x64xf32, #tpu.memory_space<vmem>>, vector<64x64xf32>
    %44 = arith.addf %43, %35 : vector<64x64xf32>
    %c65_22 = arith.constant 65 : index
    %c0_23 = arith.constant 0 : index
    %45 = vector.load %arg6[%c65_22, %c0_23] : memref<256x64xf32, #tpu.memory_space<vmem>>, vector<64x64xf32>
    tpu.vector_store %arg6[%c65_22, %c0_23], %44 {strides = array<i32>} : memref<256x64xf32, #tpu.memory_space<vmem>>, vector<64x64xf32>,
    %c63 = arith.constant 63 : index
    %c0_24 = arith.constant 0 : index
    %46 = vector.load %arg6[%c63, %c0_24] : memref<256x64xf32, #tpu.memory_space<vmem>>, vector<64x64xf32>
    %47 = arith.addf %46, %41 : vector<64x64xf32>
    %c63_25 = arith.constant 63 : index
    %c0_26 = arith.constant 0 : index
    %48 = vector.load %arg6[%c63_25, %c0_26] : memref<256x64xf32, #tpu.memory_space<vmem>>, vector<64x64xf32>
    tpu.vector_store %arg6[%c63_25, %c0_26], %47 {strides = array<i32>} : memref<256x64xf32, #tpu.memory_space<vmem>>, vector<64x64xf32>,
    %c0_27 = arith.constant 0 : index
    %c0_28 = arith.constant 0 : index
    %49 = vector.load %arg6[%c0_27, %c0_28] : memref<256x64xf32, #tpu.memory_space<vmem>>, vector<64x64xf32>
    %c0_29 = arith.constant 0 : index
    %c0_30 = arith.constant 0 : index
    %c0_31 = arith.constant 0 : index
    %50 = vector.load %arg3[%c0_29, %c0_30, %c0_31] : memref<9x64x64xf32, #tpu.memory_space<vmem>>, vector<1x64x64xf32>
    %51 = vector.shape_cast %50 : vector<1x64x64xf32> to vector<64x64xf32>
    %cst_32 = arith.constant dense<0.000000e+00> : vector<64x64xf32>
    %52 = tpu.matmul %49, %51, %cst_32 {dimension_numbers = #tpu.dot_dimension_numbers<[1], [0], [0], [1], [0, 0, 1, 1], [], []>} : vector<64x64xf32>, vector<64x64xf32>, vector<64x64xf32> -> vector<64x64xf32>
    %c16 = arith.constant 16 : index
    %c0_33 = arith.constant 0 : index
    %53 = vector.load %arg6[%c16, %c0_33] : memref<256x64xf32, #tpu.memory_space<vmem>>, vector<64x64xf32>
    %c1_34 = arith.constant 1 : index
    %c0_35 = arith.constant 0 : index
    %c0_36 = arith.constant 0 : index
    %54 = vector.load %arg3[%c1_34, %c0_35, %c0_36] : memref<9x64x64xf32, #tpu.memory_space<vmem>>, vector<1x64x64xf32>
    %55 = vector.shape_cast %54 : vector<1x64x64xf32> to vector<64x64xf32>
    %cst_37 = arith.constant dense<0.000000e+00> : vector<64x64xf32>
    %56 = tpu.matmul %53, %55, %cst_37 {dimension_numbers = #tpu.dot_dimension_numbers<[1], [0], [0], [1], [0, 0, 1, 1], [], []>} : vector<64x64xf32>, vector<64x64xf32>, vector<64x64xf32> -> vector<64x64xf32>
    %57 = arith.addf %52, %56 : vector<64x64xf32>
    %c32 = arith.constant 32 : index
    %c0_38 = arith.constant 0 : index
    %58 = vector.load %arg6[%c32, %c0_38] : memref<256x64xf32, #tpu.memory_space<vmem>>, vector<64x64xf32>
    %c2_39 = arith.constant 2 : index
    %c0_40 = arith.constant 0 : index
    %c0_41 = arith.constant 0 : index
    %59 = vector.load %arg3[%c2_39, %c0_40, %c0_41] : memref<9x64x64xf32, #tpu.memory_space<vmem>>, vector<1x64x64xf32>
    %60 = vector.shape_cast %59 : vector<1x64x64xf32> to vector<64x64xf32>
    %cst_42 = arith.constant dense<0.000000e+00> : vector<64x64xf32>
    %61 = tpu.matmul %58, %60, %cst_42 {dimension_numbers = #tpu.dot_dimension_numbers<[1], [0], [0], [1], [0, 0, 1, 1], [], []>} : vector<64x64xf32>, vector<64x64xf32>, vector<64x64xf32> -> vector<64x64xf32>
    %62 = arith.addf %57, %61 : vector<64x64xf32>
    %c64_43 = arith.constant 64 : index
    %c0_44 = arith.constant 0 : index
    %63 = vector.load %arg6[%c64_43, %c0_44] : memref<256x64xf32, #tpu.memory_space<vmem>>, vector<64x64xf32>
    %c3 = arith.constant 3 : index
    %c0_45 = arith.constant 0 : index
    %c0_46 = arith.constant 0 : index
    %64 = vector.load %arg3[%c3, %c0_45, %c0_46] : memref<9x64x64xf32, #tpu.memory_space<vmem>>, vector<1x64x64xf32>
    %65 = vector.shape_cast %64 : vector<1x64x64xf32> to vector<64x64xf32>
    %cst_47 = arith.constant dense<0.000000e+00> : vector<64x64xf32>
    %66 = tpu.matmul %63, %65, %cst_47 {dimension_numbers = #tpu.dot_dimension_numbers<[1], [0], [0], [1], [0, 0, 1, 1], [], []>} : vector<64x64xf32>, vector<64x64xf32>, vector<64x64xf32> -> vector<64x64xf32>
    %67 = arith.addf %62, %66 : vector<64x64xf32>
    %c72 = arith.constant 72 : index
    %c0_48 = arith.constant 0 : index
    %68 = vector.load %arg6[%c72, %c0_48] : memref<256x64xf32, #tpu.memory_space<vmem>>, vector<64x64xf32>
    %c4 = arith.constant 4 : index
    %c0_49 = arith.constant 0 : index
    %c0_50 = arith.constant 0 : index
    %69 = vector.load %arg3[%c4, %c0_49, %c0_50] : memref<9x64x64xf32, #tpu.memory_space<vmem>>, vector<1x64x64xf32>
    %70 = vector.shape_cast %69 : vector<1x64x64xf32> to vector<64x64xf32>
    %cst_51 = arith.constant dense<0.000000e+00> : vector<64x64xf32>
    %71 = tpu.matmul %68, %70, %cst_51 {dimension_numbers = #tpu.dot_dimension_numbers<[1], [0], [0], [1], [0, 0, 1, 1], [], []>} : vector<64x64xf32>, vector<64x64xf32>, vector<64x64xf32> -> vector<64x64xf32>
    %72 = arith.addf %67, %71 : vector<64x64xf32>
    %c80 = arith.constant 80 : index
    %c0_52 = arith.constant 0 : index
    %73 = vector.load %arg6[%c80, %c0_52] : memref<256x64xf32, #tpu.memory_space<vmem>>, vector<64x64xf32>
    %c5 = arith.constant 5 : index
    %c0_53 = arith.constant 0 : index
    %c0_54 = arith.constant 0 : index
    %74 = vector.load %arg3[%c5, %c0_53, %c0_54] : memref<9x64x64xf32, #tpu.memory_space<vmem>>, vector<1x64x64xf32>
    %75 = vector.shape_cast %74 : vector<1x64x64xf32> to vector<64x64xf32>
    %cst_55 = arith.constant dense<0.000000e+00> : vector<64x64xf32>
    %76 = tpu.matmul %73, %75, %cst_55 {dimension_numbers = #tpu.dot_dimension_numbers<[1], [0], [0], [1], [0, 0, 1, 1], [], []>} : vector<64x64xf32>, vector<64x64xf32>, vector<64x64xf32> -> vector<64x64xf32>
    %77 = arith.addf %72, %76 : vector<64x64xf32>
    %c128 = arith.constant 128 : index
    %c0_56 = arith.constant 0 : index
    %78 = vector.load %arg6[%c128, %c0_56] : memref<256x64xf32, #tpu.memory_space<vmem>>, vector<64x64xf32>
    %c6 = arith.constant 6 : index
    %c0_57 = arith.constant 0 : index
    %c0_58 = arith.constant 0 : index
    %79 = vector.load %arg3[%c6, %c0_57, %c0_58] : memref<9x64x64xf32, #tpu.memory_space<vmem>>, vector<1x64x64xf32>
    %80 = vector.shape_cast %79 : vector<1x64x64xf32> to vector<64x64xf32>
    %cst_59 = arith.constant dense<0.000000e+00> : vector<64x64xf32>
    %81 = tpu.matmul %78, %80, %cst_59 {dimension_numbers = #tpu.dot_dimension_numbers<[1], [0], [0], [1], [0, 0, 1, 1], [], []>} : vector<64x64xf32>, vector<64x64xf32>, vector<64x64xf32> -> vector<64x64xf32>
    %82 = arith.addf %77, %81 : vector<64x64xf32>
    %c160 = arith.constant 160 : index
    %c0_60 = arith.constant 0 : index
    %83 = vector.load %arg6[%c160, %c0_60] : memref<256x64xf32, #tpu.memory_space<vmem>>, vector<64x64xf32>
    %c7 = arith.constant 7 : index
    %c0_61 = arith.constant 0 : index
    %c0_62 = arith.constant 0 : index
    %84 = vector.load %arg3[%c7, %c0_61, %c0_62] : memref<9x64x64xf32, #tpu.memory_space<vmem>>, vector<1x64x64xf32>
    %85 = vector.shape_cast %84 : vector<1x64x64xf32> to vector<64x64xf32>
    %cst_63 = arith.constant dense<0.000000e+00> : vector<64x64xf32>
    %86 = tpu.matmul %83, %85, %cst_63 {dimension_numbers = #tpu.dot_dimension_numbers<[1], [0], [0], [1], [0, 0, 1, 1], [], []>} : vector<64x64xf32>, vector<64x64xf32>, vector<64x64xf32> -> vector<64x64xf32>
    %87 = arith.addf %82, %86 : vector<64x64xf32>
    %c192 = arith.constant 192 : index
    %c0_64 = arith.constant 0 : index
    %88 = vector.load %arg6[%c192, %c0_64] : memref<256x64xf32, #tpu.memory_space<vmem>>, vector<64x64xf32>
    %c8 = arith.constant 8 : index
    %c0_65 = arith.constant 0 : index
    %c0_66 = arith.constant 0 : index
    %89 = vector.load %arg3[%c8, %c0_65, %c0_66] : memref<9x64x64xf32, #tpu.memory_space<vmem>>, vector<1x64x64xf32>
    %90 = vector.shape_cast %89 : vector<1x64x64xf32> to vector<64x64xf32>
    %cst_67 = arith.constant dense<0.000000e+00> : vector<64x64xf32>
    %91 = tpu.matmul %88, %90, %cst_67 {dimension_numbers = #tpu.dot_dimension_numbers<[1], [0], [0], [1], [0, 0, 1, 1], [], []>} : vector<64x64xf32>, vector<64x64xf32>, vector<64x64xf32> -> vector<64x64xf32>
    %92 = arith.addf %87, %91 : vector<64x64xf32>
    %c0_68 = arith.constant 0 : index
    %c0_69 = arith.constant 0 : index
    %93 = vector.load %arg4[%c0_68, %c0_69] : memref<1x64xf32, #tpu.memory_space<vmem>>, vector<1x64xf32>
    %94 = vector.broadcast %93 : vector<1x64xf32> to vector<64x64xf32>
    %95 = arith.addf %92, %94 : vector<64x64xf32>
    %c0_70 = arith.constant 0 : index
    %c0_71 = arith.constant 0 : index
    %c0_72 = arith.constant 0 : index
    %96 = vector.load %arg5[%c0_70, %c0_71, %c0_72] : memref<1x64x64xf32, #tpu.memory_space<vmem>>, vector<1x64x64xf32>
    %97 = vector.shape_cast %96 : vector<1x64x64xf32> to vector<64x64xf32>
    %98 = vector.shape_cast %95 : vector<64x64xf32> to vector<1x64x64xf32>
    tpu.vector_store %arg5[%c0_70, %c0_71, %c0_72], %98 {strides = array<i32>} : memref<1x64x64xf32, #tpu.memory_space<vmem>>, vector<1x64x64xf32>,
    return
  }
  func.func @transform_0(%arg0: i32) -> (i32, i32, i32) {
    %c0_i32 = arith.constant 0 : i32
    %c0_i32_0 = arith.constant 0 : i32
    %c0_i32_1 = arith.constant 0 : i32
    return %arg0, %c0_i32, %c0_i32_0 : i32, i32, i32
  }
  func.func @transform_1(%arg0: i32) -> (i32, i32, i32) {
    %c0_i32 = arith.constant 0 : i32
    %c0_i32_0 = arith.constant 0 : i32
    %c0_i32_1 = arith.constant 0 : i32
    %c0_i32_2 = arith.constant 0 : i32
    return %c0_i32, %c0_i32_0, %c0_i32_1 : i32, i32, i32
  }
  func.func @transform_2(%arg0: i32) -> (i32, i32, i32) {
    %c0_i32 = arith.constant 0 : i32
    %c0_i32_0 = arith.constant 0 : i32
    %c0_i32_1 = arith.constant 0 : i32
    %c0_i32_2 = arith.constant 0 : i32
    return %c0_i32, %c0_i32_0, %c0_i32_1 : i32, i32, i32
  }
  func.func @transform_3(%arg0: i32) -> (i32, i32) {
    %c0_i32 = arith.constant 0 : i32
    %c0_i32_0 = arith.constant 0 : i32
    %c0_i32_1 = arith.constant 0 : i32
    return %c0_i32, %c0_i32_0 : i32, i32
  }
  func.func @transform_4(%arg0: i32) -> (i32, i32, i32) {
    %c0_i32 = arith.constant 0 : i32
    %c0_i32_0 = arith.constant 0 : i32
    %c0_i32_1 = arith.constant 0 : i32
    return %arg0, %c0_i32, %c0_i32_0 : i32, i32, i32
  }
}

</mosaic_0001>

<bundles_post_ra>
// kernel: tile.8
= control target key start
LH: loop header
LB: loop body
LE: loop exit
PB: predicated region body
PF: predicated region fallthrough
CT: control target
= control target key end

     0   :  { %s22_s0 = inlined_call_operand.vmem [shape: f32[8], index: 0, kind: input, shape index: {}]   ;;  %s23_s1 = inlined_call_operand.vmem [shape: f32[8,8], index: 1, kind: output, shape index: {}]  }
   0x1   :  { %v4_v0 = vld [vmem:[%s22_s0] ss:$0 sm:$0xff] }
   0x2   :  { %5 = vst [vmem:[%s23_s1] sm:$0xff] %v4_v0 }

// kernel: tile.9
= control target key start
LH: loop header
LB: loop body
LE: loop exit
PB: predicated region body
PF: predicated region fallthrough
CT: control target
= control target key end

     0   :  { %s67_s10 = smov 56   ;;  %s68_s11 = smov 40   ;;  %vm3_vm0 = vcmask 64512   ;;  %vm9_vm1 = vcmask 523712   ;;  %vm15_vm2 = vcmask 458112   ;;  %vm21_vm3 = vcmask 392512   ;;  %s111_s0 = inlined_call_operand.vmem [shape: f32[8,8], index: 0, kind: input, shape index: {}]   ;;  %s112_s1 = inlined_call_operand.vmem [shape: f32[1,64], index: 1, kind: output, shape index: {}]  }
   0x1   :  { %v53_v0 = vld [vmem:[%s111_s0 + $0x7] sm:$0x1]   ;;  %v55_v1 = vld [vmem:[%s111_s0 + $0x5] sm:$0x1]   ;;  %v57_v2 = vld [vmem:[%s111_s0 + $0x3] sm:$0x1]  }
   0x2   :  { %7 = vrot.lane.b32.xlu0 %v53_v0, %s67_s10  ;;  %19 = vrot.lane.b32.xlu1 %v55_v1, %s68_s11  ;;  %s69_s14 = smov 24   ;;  %v54_v3 = vld [vmem:[%s111_s0 + $0x6] sm:$0x1]   ;;  %v56_v4 = vld [vmem:[%s111_s0 + $0x4] sm:$0x1]   ;;  %s70_s21 = smov 48  }
   0x3   :  { %31 = vrot.lane.b32.xlu2 %v57_v2, %s69_s14  ;;  %v58_v5 = vld [vmem:[%s111_s0 + $0x2] sm:$0x1]   ;;  %s71_s22 = smov 32   ;;  %s72_s23 = smov 16   ;;  %v59_v6 = vld [vmem:[%s111_s0 + $0x1] sm:$0x1]  }
   0x4   :  { %s73_s26 = smov 8   ;;  %v2_v7 = vld [vmem:[%s111_s0] sm:$0x1]   ;;  %vm27_vm4 = vcmask 326912   ;;  %vm33_vm5 = vcmask 261312   ;;  %vm39_vm6 = vcmask 195712  }
   0x5   :  { %4 = vst.msk [vmem:[#allocation0] sm:$0x1] %vm3_vm0, %v2_v7   ;;  %vm45_vm7 = vcmask 130112  }
   0xa   :  { %13 = vrot.lane.b32.xlu0 %v54_v3, %s70_s21  ;;  %25 = vrot.lane.b32.xlu1 %v56_v4, %s71_s22 }
   0xb   :  { %37 = vrot.lane.b32.xlu2 %v58_v5, %s72_s23 }
  0x12   :  { %43 = vrot.lane.b32.xlu0 %v59_v6, %s73_s26 }
  0x5d   :  { %v32_v8 = vpop.permute.xlu2 %31  }
  0x65   :  { %v38_v9 = vpop.permute.xlu2 %37  }
  0x74   :  { %v8_v10 = vpop.permute.xlu0 %7   ;;  %v20_v11 = vpop.permute.xlu1 %19  }
  0x75   :  { %10 = vst.msk [vmem:[#allocation0] sm:$0x1] %vm9_vm1, %v8_v10  }
  0x7c   :  { %v14_v12 = vpop.permute.xlu0 %13   ;;  %v26_v13 = vpop.permute.xlu1 %25  }
  0x7d   :  { %16 = vst.msk [vmem:[#allocation0] sm:$0x1] %vm15_vm2, %v14_v12  }
  0x7e   :  { %22 = vst.msk [vmem:[#allocation0] sm:$0x1] %vm21_vm3, %v20_v11  }
  0x7f   :  { %28 = vst.msk [vmem:[#allocation0] sm:$0x1] %vm27_vm4, %v26_v13  }
  0x80   :  { %34 = vst.msk [vmem:[#allocation0] sm:$0x1] %vm33_vm5, %v32_v8  }
  0x81   :  { %40 = vst.msk [vmem:[#allocation0] sm:$0x1] %vm39_vm6, %v38_v9  }
  0x84   :  { %v44_v14 = vpop.permute.xlu0 %43  }
  0x85   :  { %46 = vst.msk [vmem:[#allocation0] sm:$0x1] %vm45_vm7, %v44_v14  }
  0x8c   :  { %v49_v15 = vld [vmem:[#allocation0] sm:$0x1] }
  0x8d   :  { %52 = vst [vmem:[%s112_s1] sm:$0x1] %v49_v15 }

// kernel: s4d_forward.1
= control target key start
LH: loop header
LB: loop body
LE: loop exit
PB: predicated region body
PF: predicated region fallthrough
CT: control target
= control target key end

     0   :  { %s1695_s15 = smov 0   ;;  %s2377_s0 = inlined_call_operand.vmem [shape: f32[2,64,32], index: 0, kind: input, shape index: {}]   ;;  %s2378_s1 = inlined_call_operand.vmem [shape: f32[3,32,64], index: 1, kind: input, shape index: {}]   ;;  %s2379_s2 = inlined_call_operand.vmem [shape: f32[9,64,64], index: 2, kind: input, shape index: {}]   ;;  %s2380_s3 = inlined_call_operand.vmem [shape: f32[1,64], index: 3, kind: input, shape index: {}]   ;;  %s2381_s4 = inlined_call_operand.vmem [shape: f32[2,64,64], index: 4, kind: output, shape index: {}]  }
   0x1 LB: > { %s1470_s16 = sadd.s32 4294967295, %s1667_s15   ;;  %p1474_p0 = scmp.ge.s32.totalorder %s1667_s15, 1  ;;  %s1667_s15 = sphi %s1695_s15, %s14_s15  }
   0x2   : > { %p162_p1 = scmp.lt.s32.totalorder %s1667_s15, 3 }
   0x4   : > { %p163_p2 = pnand %p1474_p0, %p162_p1 }
   0x5   : > { %p188_p3 = scmp.lt.s32.totalorder (!%p163_p2), %s1470_s16, 1 }
   0x6   : > { %166 = sbr.rel (%p163_p2) target bundleno = 462 (0x1ce), region = 36 }
   0xb   : > { %v1482_v0 = vld [vmem:[%s2378_s1 + $0x38] sm:$0xff]  ;;  %v1481_v1 = vld [vmem:[%s2378_s1 + $0x30] sm:$0xff]  ;;  %v1480_v4 = vld [vmem:[%s2378_s1 + $0x28] sm:$0xff]  ;;  %s2411_s16 = smov (!%p188_p3, %s1470_s16), 1  ;;  %vm349_vm0 = vcmask 261120   ;;  %vm198_vm1 = vcmask 523264   ;;  %v239_v60 = vlaneseq }
   0xc   : > { %386 = vmatpush.msra.mxu0 %v1482_v0  ;;  %v418_v2 = vld [vmem:[%s2378_s1 + $0x18] sm:$0xff]  ;;  %v417_v3 = vld [vmem:[%s2378_s1 + $0x10] sm:$0xff]  ;;  %v416_v6 = vld [vmem:[%s2378_s1 + $0x8] sm:$0xff]  ;;  %s1649_s9 = sshll.u32 %s2411_s16, 6  ;;  %v1669_v18 = vmov 0.0  }
   0xd   : > { %431 = vmatpush.msra.mxu1 %v418_v2  ;;  %v1502_v5 = vld [vmem:[%s2378_s1 + $0x58] sm:$0xff]  ;;  %v1501_v7 = vld [vmem:[%s2378_s1 + $0x50] sm:$0xff]  ;;  %v1479_v8 = vld [vmem:[%s2378_s1 + $0x20] sm:$0xff]  ;;  %s1741_s14 = scalar_lea.vmem %s2377_s0, %s1649_s9  ;;  %199 = vst.msk [vmem:[#allocation2] sm:$0xff] %vm198_vm1, %v1669_v18  ;;  %v1957_v63 = vshrl.u32 %v239_v60, 7  ;;  %s2327_s6 = scalar_lea.vmem %s2381_s4, %s1649_s9 }
   0xe   : > { %387 = vmatpush.msra.mxu0 %v1481_v1  ;;  %477 = vmatpush.msra.mxu2 %v1502_v5  ;;  %v1500_v9 = vld [vmem:[%s2378_s1 + $0x48] sm:$0xff]  ;;  %v415_v10 = vld [vmem:[%s2378_s1] sm:$0xff]  ;;  %v233_v14 = vld [vmem:[%s1741_s14 + $0x10] sm:$0xff]  ;;  %200 = vst.msk [vmem:[#allocation2 + $0x8] sm:$0xff] %vm198_vm1, %v1669_v18 }
   0xf   : > { %432 = vmatpush.msra.mxu1 %v417_v3  ;;  %v231_v11 = vld [vmem:[%s1741_s14] sm:$0xff]  ;;  %v232_v13 = vld [vmem:[%s1741_s14 + $0x8] sm:$0xff]  ;;  %v234_v15 = vld [vmem:[%s1741_s14 + $0x18] sm:$0xff]  ;;  %201 = vst.msk [vmem:[#allocation2 + $0x10] sm:$0xff] %vm198_vm1, %v1669_v18  ;;  %v252_v2 = vand.u32 7, %v1957_v63 }
  0x10   : > { %388 = vmatpush.msra.mxu0 %v1480_v4  ;;  %478 = vmatpush.msra.mxu2 %v1501_v7  ;;  %v1499_v12 = vld [vmem:[%s2378_s1 + $0x40] sm:$0xff]  ;;  %v641_v16 = vld [vmem:[%s2379_s2 + $0x38] sm:$0xff]  ;;  %v640_v17 = vld [vmem:[%s2379_s2 + $0x30] sm:$0xff]  ;;  %202 = vst.msk [vmem:[#allocation2 + $0x18] sm:$0xff] %vm198_vm1, %v1669_v18 }
  0x11   : > { %433 = vmatpush.msra.mxu1 %v416_v6  ;;  %v639_v19 = vld [vmem:[%s2379_s2 + $0x28] sm:$0xff]  ;;  %v235_v20 = vld [vmem:[%s1741_s14 + $0x20] sm:$0xff]  ;;  %203 = vst.msk [vmem:[#allocation2 + $0x20] sm:$0xff] %vm198_vm1, %v1669_v18  ;;  %v637_v22 = vld [vmem:[%s2379_s2 + $0x18] sm:$0xff]  ;;  %vm506_vm2 = vcmp.eq.s32.totalorder %v252_v2, 7  ;;  %vm1999_vm4 = vcmp.eq.s32.totalorder %v252_v2, 0 }
  0x12   : > { %389 = vmatpush.msra.mxu0 %v1479_v8  ;;  %479 = vmatpush.msra.mxu2 %v1500_v9  ;;  %v638_v21 = vld [vmem:[%s2379_s2 + $0x20] sm:$0xff]  ;;  %204 = vst.msk [vmem:[#allocation2 + $0x28] sm:$0xff] %vm198_vm1, %v1669_v18  ;;  %v1518_v23 = vld [vmem:[%s2379_s2 + $0x78] sm:$0xff]  ;;  %v1517_v24 = vld [vmem:[%s2379_s2 + $0x70] sm:$0xff]  ;;  %v241_v8 = vadd.s32 8, %v1957_v63 }
  0x13   : > { %1483 = vmatmul.msk.f32.vlgmr.msra.gmra.mxu0 %vm349_vm0, %v231_v11  ;;  %434 = vmatpush.msra.mxu1 %v415_v10  ;;  %205 = vst.msk [vmem:[#allocation2 + $0x30] sm:$0xff] %vm198_vm1, %v1669_v18  ;;  %v636_v25 = vld [vmem:[%s2379_s2 + $0x10] sm:$0xff]  ;;  %v1516_v26 = vld [vmem:[%s2379_s2 + $0x68] sm:$0xff]  ;;  %v1515_v29 = vld [vmem:[%s2379_s2 + $0x60] sm:$0xff] }
  0x14   : > { %1491 = vmatmul.msk.f32.vlgmr.msra.gmra.mxu1 %vm349_vm0, %v231_v11  ;;  %480 = vmatpush.msra.mxu2 %v1499_v12  ;;  %206 = vst.msk [vmem:[#allocation2 + $0x38] sm:$0xff] %vm198_vm1, %v1669_v18  ;;  %v635_v27 = vld [vmem:[%s2379_s2 + $0x8] sm:$0xff]  ;;  %v634_v30 = vld [vmem:[%s2379_s2] sm:$0xff]  ;;  %v1514_v31 = vld [vmem:[%s2379_s2 + $0x58] sm:$0xff] }
  0x15   : > { %1503 = vmatmul.msk.f32.vlgmr.msra.gmra.mxu2 %vm349_vm0, %v231_v11  ;;  %732 = vmatpush.msrb.mxu0 %v641_v16  ;;  %207 = vst.msk [vmem:[#allocation2 + $0x40] sm:$0xff] %vm198_vm1, %v1669_v18  ;;  %v236_v28 = vld [vmem:[%s1741_s14 + $0x28] sm:$0xff]  ;;  %v1542_v32 = vld [vmem:[%s2379_s2 + $0xb8] sm:$0xff]  ;;  %v1513_v33 = vld [vmem:[%s2379_s2 + $0x50] sm:$0xff] }
  0x16   : > { %685 = vmatpush.msra.mxu3 %v1518_v23  ;;  %208 = vst.msk [vmem:[#allocation2 + $0x48] sm:$0xff] %vm198_vm1, %v1669_v18  ;;  %v1541_v34 = vld [vmem:[%s2379_s2 + $0xb0] sm:$0xff]  ;;  %v1558_v35 = vld [vmem:[%s2379_s2 + $0xf8] sm:$0xff]  ;;  %814 = vmatpush.msrb.mxu1 %v1542_v32  ;;  %v1512_v36 = vld [vmem:[%s2379_s2 + $0x48] sm:$0xff] }
  0x17   : > { %733 = vmatpush.msrb.mxu0 %v640_v17  ;;  %209 = vst.msk [vmem:[#allocation2 + $0x50] sm:$0xff] %vm198_vm1, %v1669_v18  ;;  %904 = vmatpush.msrb.mxu2 %v1558_v35  ;;  %v1540_v37 = vld [vmem:[%s2379_s2 + $0xa8] sm:$0xff]  ;;  %v237_v38 = vld [vmem:[%s1741_s14 + $0x30] sm:$0xff]  ;;  %v1511_v39 = vld [vmem:[%s2379_s2 + $0x40] sm:$0xff] }
  0x18   : > { %686 = vmatpush.msra.mxu3 %v1517_v24  ;;  %210 = vst.msk [vmem:[#allocation2 + $0x58] sm:$0xff] %vm198_vm1, %v1669_v18  ;;  %815 = vmatpush.msrb.mxu1 %v1541_v34  ;;  %v628_v40 = vld [vmem:[#allocation2 + $0x10] sm:$0xff]  ;;  %v1539_v41 = vld [vmem:[%s2379_s2 + $0xa0] sm:$0xff]  ;;  %v1574_v42 = vld [vmem:[%s2379_s2 + $0x138] sm:$0xff] }
  0x19   : > { %734 = vmatpush.msrb.mxu0 %v639_v19  ;;  %211 = vst.msk [vmem:[#allocation2 + $0x60] sm:$0xff] %vm198_vm1, %v1669_v18  ;;  %v1538_v43 = vld [vmem:[%s2379_s2 + $0x98] sm:$0xff]  ;;  %v626_v45 = vld [vmem:[#allocation2] sm:$0xff]  ;;  %v627_v46 = vld [vmem:[#allocation2 + $0x8] sm:$0xff] }
  0x1a   : > { %687 = vmatpush.msra.mxu3 %v1516_v26  ;;  %212 = vst.msk [vmem:[#allocation2 + $0x68] sm:$0xff] %vm198_vm1, %v1669_v18  ;;  %816 = vmatpush.msrb.mxu1 %v1540_v37  ;;  %v238_v44 = vld [vmem:[%s1741_s14 + $0x38] sm:$0xff]  ;;  %v1537_v47 = vld [vmem:[%s2379_s2 + $0x90] sm:$0xff]  ;;  %v1536_v48 = vld [vmem:[%s2379_s2 + $0x88] sm:$0xff] }
  0x1b   : > { %1484 = vmatmul.msk.f32.gmra.mxu0 %vm349_vm0, %v232_v13  ;;  %213 = vst.msk [vmem:[#allocation2 + $0x70] sm:$0xff] %vm198_vm1, %v1669_v18  ;;  %v1557_v49 = vld [vmem:[%s2379_s2 + $0xf0] sm:$0xff]  ;;  %v1535_v50 = vld [vmem:[%s2379_s2 + $0x80] sm:$0xff]  ;;  %v629_v51 = vld [vmem:[#allocation2 + $0x18] sm:$0xff] }
  0x1c   : > { %1492 = vmatmul.msk.f32.gmra.mxu1 %vm349_vm0, %v232_v13  ;;  %735 = vmatpush.msrb.mxu0 %v638_v21  ;;  %214 = vst.msk [vmem:[#allocation2 + $0x78] sm:$0xff] %vm198_vm1, %v1669_v18  ;;  %v765_v52 = vld [vmem:[#allocation2 + $0x20] sm:$0xff]  ;;  %v1573_v53 = vld [vmem:[%s2379_s2 + $0x130] sm:$0xff]  ;;  %v766_v54 = vld [vmem:[#allocation2 + $0x28] sm:$0xff] }
  0x1d   : > { %1504 = vmatmul.msk.f32.gmra.mxu2 %vm349_vm0, %v232_v13  ;;  %688 = vmatpush.msra.mxu3 %v1515_v29  ;;  %215 = vst.msk [vmem:[#allocation2 + $0x80] sm:$0xff] %vm198_vm1, %v1669_v18  ;;  %v1556_v55 = vld [vmem:[%s2379_s2 + $0xe8] sm:$0xff]  ;;  %v767_v57 = vld [vmem:[#allocation2 + $0x30] sm:$0xff]  ;;  %v1555_v58 = vld [vmem:[%s2379_s2 + $0xe0] sm:$0xff]  ;;  %v259_v13 = vand.u32 7, %v241_v8 }
  0x1e   : > { %736 = vmatpush.msrb.mxu0 %v637_v22  ;;  %216 = vst.msk [vmem:[#allocation2 + $0x88] sm:$0xff] %vm198_vm1, %v1669_v18  ;;  %817 = vmatpush.msrb.mxu1 %v1539_v41  ;;  %v1572_v56 = vld [vmem:[%s2379_s2 + $0x128] sm:$0xff]  ;;  %v1571_v59 = vld [vmem:[%s2379_s2 + $0x120] sm:$0xff]  ;;  %v1554_v0 = vld [vmem:[%s2379_s2 + $0xd8] sm:$0xff]  ;;  %v242_v22 = vadd.s32 16, %v1957_v63 }
  0x1f   : > { %689 = vmatpush.msra.mxu3 %v1514_v31  ;;  %217 = vst.msk [vmem:[#allocation2 + $0x90] sm:$0xff] %vm198_vm1, %v1669_v18  ;;  %905 = vmatpush.msrb.mxu2 %v1557_v49  ;;  %v1570_v1 = vld [vmem:[%s2379_s2 + $0x118] sm:$0xff]  ;;  %v1553_v3 = vld [vmem:[%s2379_s2 + $0xd0] sm:$0xff]  ;;  %v1552_v7 = vld [vmem:[%s2379_s2 + $0xc8] sm:$0xff]  ;;  %vm1991_vm3 = vcmp.eq.s32.totalorder %v259_v13, 7  ;;  %vm2035_vm6 = vcmp.eq.s32.totalorder %v259_v13, 0 }
  0x20   : > { %737 = vmatpush.msrb.mxu0 %v636_v25  ;;  %218 = vst.msk [vmem:[#allocation2 + $0x98] sm:$0xff] %vm198_vm1, %v1669_v18  ;;  %818 = vmatpush.msrb.mxu1 %v1538_v43  ;;  %v1551_v9 = vld [vmem:[%s2379_s2 + $0xc0] sm:$0xff]  ;;  %v1569_v10 = vld [vmem:[%s2379_s2 + $0x110] sm:$0xff]  ;;  %v1590_v12 = vld [vmem:[%s2379_s2 + $0x178] sm:$0xff] }
  0x21   : > { %690 = vmatpush.msra.mxu3 %v1513_v33  ;;  %219 = vst.msk [vmem:[#allocation2 + $0xa0] sm:$0xff] %vm198_vm1, %v1669_v18  ;;  %906 = vmatpush.msrb.mxu2 %v1556_v55  ;;  %v1589_v17 = vld [vmem:[%s2379_s2 + $0x170] sm:$0xff]  ;;  %v1587_v23 = vld [vmem:[%s2379_s2 + $0x160] sm:$0xff]  ;;  %v1568_v25 = vld [vmem:[%s2379_s2 + $0x108] sm:$0xff] }
  0x22   : > { %738 = vmatpush.msrb.mxu0 %v635_v27  ;;  %220 = vst.msk [vmem:[#allocation2 + $0xa8] sm:$0xff] %vm198_vm1, %v1669_v18  ;;  %819 = vmatpush.msrb.mxu1 %v1537_v47  ;;  %v1586_v27 = vld [vmem:[%s2379_s2 + $0x158] sm:$0xff]  ;;  %v1585_v33 = vld [vmem:[%s2379_s2 + $0x150] sm:$0xff]  ;;  %v1584_v37 = vld [vmem:[%s2379_s2 + $0x148] sm:$0xff] }
  0x23   : > { %1485 = vmatmul.msk.f32.gmra.mxu0 %vm349_vm0, %v233_v14  ;;  %691 = vmatpush.msra.mxu3 %v1512_v36  ;;  %221 = vst.msk [vmem:[#allocation2 + $0xb0] sm:$0xff] %vm198_vm1, %v1669_v18  ;;  %v1567_v41 = vld [vmem:[%s2379_s2 + $0x100] sm:$0xff]  ;;  %v1604_v55 = vld [vmem:[%s2379_s2 + $0x1a8] sm:$0xff]  ;;  %v1602_v2 = vld [vmem:[%s2379_s2 + $0x198] sm:$0xff] }
  0x24   : > { %1493 = vmatmul.msk.f32.gmra.mxu1 %vm349_vm0, %v233_v14  ;;  %739 = vmatpush.msrb.mxu0 %v634_v30  ;;  %222 = vst.msk [vmem:[#allocation2 + $0xb8] sm:$0xff] %vm198_vm1, %v1669_v18  ;;  %v1603_v60 = vld [vmem:[%s2379_s2 + $0x1a0] sm:$0xff]  ;;  %v1601_v8 = vld [vmem:[%s2379_s2 + $0x190] sm:$0xff]  ;;  %v1620_v21 = vld [vmem:[%s2379_s2 + $0x1e8] sm:$0xff] }
  0x25   : > { %1505 = vmatmul.msk.f32.gmra.mxu2 %vm349_vm0, %v233_v14  ;;  %692 = vmatpush.msra.mxu3 %v1511_v39  ;;  %223 = vst.msk [vmem:[#allocation2 + $0xc0] sm:$0xff] %vm198_vm1, %v1669_v18 }
  0x26   : > { %1519 = vmatmul.msk.f32.vlgmr.msra.gmra.mxu3 %vm198_vm1, %v628_v40  ;;  %224 = vst.msk [vmem:[#allocation2 + $0xc8] sm:$0xff] %vm198_vm1, %v1669_v18  ;;  %820 = vmatpush.msrb.mxu1 %v1536_v48 }
  0x27   : > { %994 = vmatpush.msrb.mxu3 %v1574_v42  ;;  %225 = vst.msk [vmem:[#allocation2 + $0xd0] sm:$0xff] %vm198_vm1, %v1669_v18  ;;  %907 = vmatpush.msrb.mxu2 %v1555_v58  ;;  %v1583_v42 = vld [vmem:[%s2379_s2 + $0x140] sm:$0xff]  ;;  %v2061_v58 = vadd.s32 32, %v1957_v63 }
  0x28   : > { %226 = vst.msk [vmem:[#allocation2 + $0xd8] sm:$0xff] %vm198_vm1, %v1669_v18  ;;  %821 = vmatpush.msrb.mxu1 %v1535_v50  ;;  %1084 = vmatpush.msra.mxu0 %v1590_v12 }
  0x29   : > { %227 = vst.msk [vmem:[#allocation2 + $0xe0] sm:$0xff] %vm198_vm1, %v1669_v18  ;;  %995 = vmatpush.msrb.mxu3 %v1573_v53  ;;  %908 = vmatpush.msrb.mxu2 %v1554_v0  ;;  %v1638_v0 = vld [vmem:[%s2379_s2 + $0x238] sm:$0xff] }
  0x2a   : > { %228 = vst.msk [vmem:[#allocation2 + $0xe8] sm:$0xff] %vm198_vm1, %v1669_v18  ;;  %1085 = vmatpush.msra.mxu0 %v1589_v17  ;;  %v1632_v17 = vld [vmem:[%s2379_s2 + $0x208] sm:$0xff] }
  0x2b   : > { %1486 = vmatmul.msk.f32.gmra.mxu0 %vm349_vm0, %v234_v15  ;;  %229 = vst.msk [vmem:[#allocation2 + $0xf0] sm:$0xff] %vm198_vm1, %v1669_v18  ;;  %996 = vmatpush.msrb.mxu3 %v1572_v56 }
  0x2c   : > { %1494 = vmatmul.msk.f32.gmra.mxu1 %vm349_vm0, %v234_v15  ;;  %230 = vst.msk [vmem:[#allocation2 + $0xf8] sm:$0xff] %vm198_vm1, %v1669_v18  ;;  %909 = vmatpush.msrb.mxu2 %v1553_v3  ;;  %v280_v3 = vand.u32 7, %v2061_v58  ;;  %v1617_v58 = vld [vmem:[%s2379_s2 + $0x1d0] sm:$0xff] }
  0x2d   : > { %1506 = vmatmul.msk.f32.gmra.mxu2 %vm349_vm0, %v234_v15  ;;  %997 = vmatpush.msrb.mxu3 %v1571_v59 }
  0x2e   : > { %1520 = vmatmul.msk.f32.gmra.mxu3 %vm198_vm1, %v629_v51  ;;  %910 = vmatpush.msrb.mxu2 %v1552_v7  ;;  %vm2096_vm9 = vcmp.eq.s32.totalorder %v280_v3, 7  ;;  %vm2147_vm12 = vcmp.eq.s32.totalorder %v280_v3, 0 }
  0x2f   : > { %998 = vmatpush.msrb.mxu3 %v1570_v1 }
  0x30   : > { %911 = vmatpush.msrb.mxu2 %v1551_v9 }
  0x31   : > { %999 = vmatpush.msrb.mxu3 %v1569_v10 }
  0x33   : > { %1487 = vmatmul.msk.f32.gmra.mxu0 %vm349_vm0, %v235_v20  ;;  %1000 = vmatpush.msrb.mxu3 %v1568_v25  ;;  %v1619_v25 = vld [vmem:[%s2379_s2 + $0x1e0] sm:$0xff] }
  0x34   : > { %1495 = vmatmul.msk.f32.gmra.mxu1 %vm349_vm0, %v235_v20 }
  0x35   : > { %1507 = vmatmul.msk.f32.gmra.mxu2 %vm349_vm0, %v235_v20  ;;  %v1588_v20 = vld [vmem:[%s2379_s2 + $0x168] sm:$0xff]  ;;  %1001 = vmatpush.msrb.mxu3 %v1567_v41 }
  0x36   : > { %1521 = vmatmul.msk.f32.gmra.mxu3 %vm198_vm1, %v765_v52  ;;  %1086 = vmatpush.msra.mxu0 %v1588_v20 }
  0x37   : > { %1354 = vmatpush.msra.mxu3 %v1638_v0 }
  0x38   : > { %1087 = vmatpush.msra.mxu0 %v1587_v23  ;;  %v1636_v23 = vld [vmem:[%s2379_s2 + $0x228] sm:$0xff] }
  0x3a   : > { %1088 = vmatpush.msra.mxu0 %v1586_v27 }
  0x3b   : > { %1488 = vmatmul.msk.f32.gmra.mxu0 %vm349_vm0, %v236_v28 }
  0x3c   : > { %1496 = vmatmul.msk.f32.gmra.mxu1 %vm349_vm0, %v236_v28  ;;  %1089 = vmatpush.msra.mxu0 %v1585_v33 }
  0x3d   : > { %1508 = vmatmul.msk.f32.gmra.mxu2 %vm349_vm0, %v236_v28  ;;  %v266_v28 = vand.u32 7, %v242_v22  ;;  %v1599_v22 = vld [vmem:[%s2379_s2 + $0x180] sm:$0xff] }
  0x3e   : > { %1522 = vmatmul.msk.f32.gmra.mxu3 %vm198_vm1, %v766_v54  ;;  %1090 = vmatpush.msra.mxu0 %v1584_v37 }
  0x3f   : > { %vm2023_vm5 = vcmp.eq.s32.totalorder %v266_v28, 7  ;;  %vm2067_vm8 = vcmp.eq.s32.totalorder %v266_v28, 0 }
  0x40   : > { %1091 = vmatpush.msra.mxu0 %v1583_v42 }
  0x43   : > { %1489 = vmatmul.msk.f32.gmra.mxu0 %vm349_vm0, %v237_v38 }
  0x44   : > { %1497 = vmatmul.msk.f32.gmra.mxu1 %vm349_vm0, %v237_v38 }
  0x45   : > { %1509 = vmatmul.msk.f32.gmra.mxu2 %vm349_vm0, %v237_v38 }
  0x46   : > { %1523 = vmatmul.msk.f32.gmra.mxu3 %vm198_vm1, %v767_v57 }
  0x4b   : > { %1490 = vmatmul.msk.f32.gmra.mxu0 %vm349_vm0, %v238_v44 }
  0x4c   : > { %1498 = vmatmul.msk.f32.gmra.mxu1 %vm349_vm0, %v238_v44 }
  0x4d   : > { %1510 = vmatmul.msk.f32.gmra.mxu2 %vm349_vm0, %v238_v44 }
  0x53   : > { %1527 = vmatmul.msk.f32.vlgmr.msrb.gmra.mxu0 %vm198_vm1, %v626_v45  ;;  %v1606_v45 = vld [vmem:[%s2379_s2 + $0x1b8] sm:$0xff] }
  0x54   : > { %1543 = vmatmul.msk.f32.vlgmr.msrb.gmra.mxu1 %vm198_vm1, %v765_v52 }
  0x55   : > { %1174 = vmatpush.msra.mxu1 %v1606_v45 }
  0x5b   : > { %1528 = vmatmul.msk.f32.gmra.mxu0 %vm198_vm1, %v627_v46 }
  0x5c   : > { %1544 = vmatmul.msk.f32.gmra.mxu1 %vm198_vm1, %v766_v54 }
  0x63   : > { %1529 = vmatmul.msk.f32.gmra.mxu0 %vm198_vm1, %v628_v40  ;;  %v243_v40 = vadd.s32 24, %v1957_v63 }
  0x64   : > { %1545 = vmatmul.msk.f32.gmra.mxu1 %vm198_vm1, %v767_v57 }
  0x65   : > { %v273_v46 = vand.u32 7, %v243_v40  ;;  %v1618_v40 = vld [vmem:[%s2379_s2 + $0x1d8] sm:$0xff] }
  0x67   : > { %vm2056_vm7 = vcmp.eq.s32.totalorder %v273_v46, 7  ;;  %vm2107_vm10 = vcmp.eq.s32.totalorder %v273_v46, 0 }
  0x6b   : > { %1530 = vmatmul.msk.f32.gmra.mxu0 %vm198_vm1, %v629_v51  ;;  %v1605_v51 = vld [vmem:[%s2379_s2 + $0x1b0] sm:$0xff] }
  0x6c   : > { %1175 = vmatpush.msra.mxu1 %v1605_v51 }
  0x6e   : > { %1176 = vmatpush.msra.mxu1 %v1604_v55 }
  0x70   : > { %1177 = vmatpush.msra.mxu1 %v1603_v60 }
  0x72   : > { %1178 = vmatpush.msra.mxu1 %v1602_v2 }
  0x73   : > { %1531 = vmatmul.msk.f32.gmra.mxu0 %vm198_vm1, %v765_v52 }
  0x74   : > { %1179 = vmatpush.msra.mxu1 %v1601_v8  ;;  %v1615_v8 = vld [vmem:[%s2379_s2 + $0x1c0] sm:$0xff] }
  0x7b   : > { %1532 = vmatmul.msk.f32.gmra.mxu0 %vm198_vm1, %v766_v54 }
  0x83   : > { %1533 = vmatmul.msk.f32.gmra.mxu0 %vm198_vm1, %v767_v57  ;;  %v1634_v57 = vld [vmem:[%s2379_s2 + $0x218] sm:$0xff] }
  0x90   : > { %v391_v61 = vpop.f32.mrf.mxu0 }
  0x91   : > { %570 = vst.msk [vmem:[#allocation2 + $0x40] sm:$0xff] %vm198_vm1, %v391_v61  ;;  %v436_v62 = vpop.f32.mrf.mxu1 }
  0x92   : > { %v530_v11 = vsel %vm506_vm2, 0.0, %v436_v62  ;;  %v1622_v62 = vld [vmem:[%s2379_s2 + $0x1f8] sm:$0xff] }
  0x93   : > { %1264 = vmatpush.msra.mxu2 %v1622_v62 }
  0x98   : > { %v394_v4 = vpop.f32.mrf.mxu0  ;;  %v482_v5 = vpop.f32.mrf.mxu2 }
  0x99   : > { %571 = vst.msk [vmem:[#allocation2 + $0x48] sm:$0xff] %vm198_vm1, %v394_v4  ;;  %v439_v6 = vpop.f32.mrf.mxu1  ;;  %v562_v30 = vsel %vm1999_vm4, 0.0, %v482_v5 }
  0x9a   : > { %v531_v26 = vsel %vm1991_vm3, 0.0, %v439_v6 }
  0xa0   : > { %v578_v14 = vld [vmem:[#allocation2 + $0x41] sm:$0xff]  ;;  %v397_v15 = vpop.f32.mrf.mxu0  ;;  %v485_v16 = vpop.f32.mrf.mxu2 }
  0xa1   : > { %v586_v18 = vadd.f32 %v578_v14, %v530_v11  ;;  %572 = vst.msk [vmem:[#allocation2 + $0x50] sm:$0xff] %vm198_vm1, %v397_v15  ;;  %v442_v19 = vpop.f32.mrf.mxu1  ;;  %v563_v48 = vsel %vm2035_vm6, 0.0, %v485_v16  ;;  %v2101_v14 = vadd.s32 40, %v1957_v63  ;;  %v1600_v16 = vld [vmem:[%s2379_s2 + $0x188] sm:$0xff] }
  0xa2   : > { %v532_v44 = vsel %vm2023_vm5, 0.0, %v442_v19  ;;  %v1637_v19 = vld [vmem:[%s2379_s2 + $0x230] sm:$0xff]  ;;  %1180 = vmatpush.msra.mxu1 %v1600_v16 }
  0xa3   : > { %594 = vst.msk [vmem:[#allocation2 + $0x41] sm:$0xff] %vm198_vm1, %v586_v18  ;;  %v1621_v18 = vld [vmem:[%s2379_s2 + $0x1f0] sm:$0xff]  ;;  %v287_v24 = vand.u32 7, %v2101_v14  ;;  %1355 = vmatpush.msra.mxu3 %v1637_v19 }
  0xa4   : > { %1265 = vmatpush.msra.mxu2 %v1621_v18  ;;  %1181 = vmatpush.msra.mxu1 %v1599_v22  ;;  %v1126_v18 = vld [vmem:[#allocation2 + $0x88] sm:$0xff] }
  0xa5   : > { %1356 = vmatpush.msra.mxu3 %v1636_v23  ;;  %vm2140_vm11 = vcmp.eq.s32.totalorder %v287_v24, 7  ;;  %vm2176_vm15 = vcmp.eq.s32.totalorder %v287_v24, 0  ;;  %v1128_v23 = vld [vmem:[#allocation2 + $0x98] sm:$0xff] }
  0xa6   : > { %1266 = vmatpush.msra.mxu2 %v1620_v21  ;;  %v1127_v21 = vld [vmem:[#allocation2 + $0x90] sm:$0xff] }
  0xa8   : > { %v579_v29 = vld [vmem:[#allocation2 + $0x49] sm:$0xff]  ;;  %v400_v31 = vpop.f32.mrf.mxu0  ;;  %v2013_v32 = vpop.f32.mrf.mxu2  ;;  %1267 = vmatpush.msra.mxu2 %v1619_v25  ;;  %v1129_v25 = vld [vmem:[#allocation2 + $0xa0] sm:$0xff] }
  0xa9   : > { %v587_v34 = vadd.f32 %v579_v29, %v531_v26  ;;  %573 = vst.msk [vmem:[#allocation2 + $0x58] sm:$0xff] %vm198_vm1, %v400_v31  ;;  %v445_v35 = vpop.f32.mrf.mxu1  ;;  %v564_v5 = vsel %vm2067_vm8, 0.0, %v2013_v32 }
  0xaa   : > { %v602_v36 = vld [vmem:[#allocation2 + $0x3f] sm:$0xff]  ;;  %v533_v1 = vsel %vm2056_vm7, 0.0, %v445_v35  ;;  %v246_v35 = vadd.s32 48, %v1957_v63  ;;  %1268 = vmatpush.msra.mxu2 %v1618_v40  ;;  %v1310_v40 = vld [vmem:[#allocation2 + $0xe8] sm:$0xff] }
  0xab   : > { %595 = vst.msk [vmem:[#allocation2 + $0x49] sm:$0xff] %vm198_vm1, %v587_v34  ;;  %v610_v38 = vadd.f32 %v602_v36, %v562_v30  ;;  %v247_v36 = vadd.s32 56, %v1957_v63  ;;  %v1635_v63 = vld [vmem:[%s2379_s2 + $0x220] sm:$0xff] }
  0xac   : > { %v294_v41 = vand.u32 7, %v246_v35  ;;  %1357 = vmatpush.msra.mxu3 %v1635_v63  ;;  %1269 = vmatpush.msra.mxu2 %v1617_v58  ;;  %v1308_v35 = vld [vmem:[#allocation2 + $0xd8] sm:$0xff] }
  0xad   : > { %618 = vst.msk [vmem:[#allocation2 + $0x3f] sm:$0xff] %vm198_vm1, %v610_v38  ;;  %v301_v42 = vand.u32 7, %v247_v36 }
  0xae   : > { %vm2167_vm13 = vcmp.eq.s32.totalorder %v294_v41, 7  ;;  %1358 = vmatpush.msra.mxu3 %v1634_v57  ;;  %vm2199_vm0 = vcmp.eq.s32.totalorder %v294_v41, 0 }
  0xaf   : > { %vm2171_vm14 = vcmp.eq.s32.totalorder %v301_v42, 7  ;;  %vm545_vm2 = vcmp.eq.s32.totalorder %v301_v42, 0 }
  0xb0   : > { %v580_v47 = vld [vmem:[#allocation2 + $0x51] sm:$0xff]  ;;  %v403_v49 = vpop.f32.mrf.mxu0  ;;  %v2046_v50 = vpop.f32.mrf.mxu2 }
  0xb1   : > { %v588_v52 = vadd.f32 %v580_v47, %v532_v44  ;;  %574 = vst.msk [vmem:[#allocation2 + $0x60] sm:$0xff] %vm198_vm1, %v403_v49  ;;  %v448_v53 = vpop.f32.mrf.mxu1  ;;  %v565_v27 = vsel %vm2107_vm10, 0.0, %v2046_v50  ;;  %v1312_v49 = vld [vmem:[#allocation2 + $0xf8] sm:$0xff] }
  0xb2   : > { %v603_v54 = vld [vmem:[#allocation2 + $0x47] sm:$0xff]  ;;  %v534_v20 = vsel %vm2096_vm9, 0.0, %v448_v53 }
  0xb3   : > { %596 = vst.msk [vmem:[#allocation2 + $0x51] sm:$0xff] %vm198_vm1, %v588_v52  ;;  %v611_v56 = vadd.f32 %v603_v54, %v563_v48 }
  0xb4   : > { %v633_v59 = vld [vmem:[#allocation2 + $0x38] sm:$0xff] }
  0xb5   : > { %619 = vst.msk [vmem:[#allocation2 + $0x47] sm:$0xff] %vm198_vm1, %v611_v56  ;;  %1524 = vmatmul.msk.f32.gmra.mxu3 %vm198_vm1, %v633_v59  ;;  %1534 = vmatmul.msk.f32.gmra.mxu0 %vm198_vm1, %v633_v59 }
  0xb6   : > { %1546 = vmatmul.msk.f32.gmra.mxu1 %vm198_vm1, %v633_v59 }
  0xb8   : > { %v581_v4 = vld [vmem:[#allocation2 + $0x59] sm:$0xff]  ;;  %v406_v6 = vpop.f32.mrf.mxu0  ;;  %v2089_v7 = vpop.f32.mrf.mxu2 }
  0xb9   : > { %v589_v9 = vadd.f32 %v581_v4, %v533_v1  ;;  %575 = vst.msk [vmem:[#allocation2 + $0x68] sm:$0xff] %vm198_vm1, %v406_v6  ;;  %v451_v10 = vpop.f32.mrf.mxu1  ;;  %v566_v44 = vsel %vm2147_vm12, 0.0, %v2089_v7  ;;  %v1633_v6 = vld [vmem:[%s2379_s2 + $0x210] sm:$0xff]  ;;  %v1616_v7 = vld [vmem:[%s2379_s2 + $0x1c8] sm:$0xff] }
  0xba   : > { %v604_v11 = vld [vmem:[#allocation2 + $0x4f] sm:$0xff]  ;;  %v535_v39 = vsel %vm2140_vm11, 0.0, %v451_v10  ;;  %1359 = vmatpush.msra.mxu3 %v1633_v6  ;;  %1270 = vmatpush.msra.mxu2 %v1616_v7 }
  0xbb   : > { %597 = vst.msk [vmem:[#allocation2 + $0x59] sm:$0xff] %vm198_vm1, %v589_v9  ;;  %v612_v12 = vadd.f32 %v604_v11, %v564_v5 }
  0xbc   : > { %v642_v15 = vld [vmem:[#allocation2 + $0x40] sm:$0xff]  ;;  %1271 = vmatpush.msra.mxu2 %v1615_v8  ;;  %1360 = vmatpush.msra.mxu3 %v1632_v17 }
  0xbd   : > { %620 = vst.msk [vmem:[#allocation2 + $0x4f] sm:$0xff] %vm198_vm1, %v612_v12  ;;  %1525 = vmatmul.msk.f32.gmra.mxu3 %vm198_vm1, %v642_v15  ;;  %1559 = vmatmul.msk.f32.vlgmr.msrb.gmra.mxu2 %vm198_vm1, %v642_v15 }
  0xbe   : > { %1547 = vmatmul.msk.f32.gmra.mxu1 %vm198_vm1, %v642_v15 }
  0xc0   : > { %v582_v26 = vld [vmem:[#allocation2 + $0x61] sm:$0xff]  ;;  %v409_v28 = vpop.f32.mrf.mxu0  ;;  %v497_v32 = vpop.f32.mrf.mxu2 }
  0xc1   : > { %v590_v29 = vadd.f32 %v582_v26, %v534_v20  ;;  %576 = vst.msk [vmem:[#allocation2 + $0x70] sm:$0xff] %vm198_vm1, %v409_v28  ;;  %v454_v30 = vpop.f32.mrf.mxu1  ;;  %v567_v60 = vsel %vm2176_vm15, 0.0, %v497_v32  ;;  %v1631_v20 = vld [vmem:[%s2379_s2 + $0x200] sm:$0xff]  ;;  %v1130_v26 = vld [vmem:[#allocation2 + $0xa8] sm:$0xff]  ;;  %v1131_v28 = vld [vmem:[#allocation2 + $0xb0] sm:$0xff] }
  0xc2   : > { %v605_v31 = vld [vmem:[#allocation2 + $0x57] sm:$0xff]  ;;  %v536_v55 = vsel %vm2167_vm13, 0.0, %v454_v30  ;;  %1361 = vmatpush.msra.mxu3 %v1631_v20  ;;  %v1306_v32 = vld [vmem:[#allocation2 + $0xc8] sm:$0xff] }
  0xc3   : > { %598 = vst.msk [vmem:[#allocation2 + $0x61] sm:$0xff] %vm198_vm1, %v590_v29  ;;  %v613_v33 = vadd.f32 %v605_v31, %v565_v27  ;;  %v2250_v27 = vpop.f32.mrf.mxu3  ;;  %v1305_v29 = vld [vmem:[#allocation2 + $0xc0] sm:$0xff]  ;;  %v1132_v31 = vld [vmem:[#allocation2 + $0xb8] sm:$0xff] }
  0xc4   : > { %v643_v37 = vld [vmem:[#allocation2 + $0x48] sm:$0xff] }
  0xc5   : > { %621 = vst.msk [vmem:[#allocation2 + $0x57] sm:$0xff] %vm198_vm1, %v613_v33  ;;  %1526 = vmatmul.msk.f32.gmra.mxu3 %vm198_vm1, %v643_v37  ;;  %1560 = vmatmul.msk.f32.gmra.mxu2 %vm198_vm1, %v643_v37  ;;  %v1307_v33 = vld [vmem:[#allocation2 + $0xd0] sm:$0xff] }
  0xc6   : > { %1548 = vmatmul.msk.f32.gmra.mxu1 %vm198_vm1, %v643_v37 }
  0xc8   : > { %v583_v43 = vld [vmem:[#allocation2 + $0x69] sm:$0xff]  ;;  %v412_v45 = vpop.f32.mrf.mxu0  ;;  %v500_v53 = vpop.f32.mrf.mxu2 }
  0xc9   : > { %v591_v46 = vadd.f32 %v583_v43, %v535_v39  ;;  %577 = vst.msk [vmem:[#allocation2 + $0x78] sm:$0xff] %vm198_vm1, %v412_v45  ;;  %v457_v50 = vpop.f32.mrf.mxu1  ;;  %v568_v9 = vsel %vm2199_vm0, 0.0, %v500_v53 }
  0xca   : > { %v606_v47 = vld [vmem:[#allocation2 + $0x5f] sm:$0xff]  ;;  %v537_v56 = vsel %vm2171_vm14, 0.0, %v457_v50 }
  0xcb   : > { %599 = vst.msk [vmem:[#allocation2 + $0x69] sm:$0xff] %vm198_vm1, %v591_v46  ;;  %v614_v48 = vadd.f32 %v606_v47, %v566_v44  ;;  %v2255_v30 = vpop.f32.mrf.mxu3  ;;  %v1311_v44 = vld [vmem:[#allocation2 + $0xf0] sm:$0xff] }
  0xcc   : > { %v771_v52 = vld [vmem:[#allocation2 + $0x50] sm:$0xff] }
  0xcd   : > { %622 = vst.msk [vmem:[#allocation2 + $0x5f] sm:$0xff] %vm198_vm1, %v614_v48  ;;  %1561 = vmatmul.msk.f32.gmra.mxu2 %vm198_vm1, %v771_v52  ;;  %1575 = vmatmul.msk.f32.vlgmr.msrb.gmra.mxu3 %vm198_vm1, %v643_v37  ;;  %v1309_v37 = vld [vmem:[#allocation2 + $0xe0] sm:$0xff] }
  0xce   : > { %1549 = vmatmul.msk.f32.gmra.mxu1 %vm198_vm1, %v771_v52  ;;  %1591 = vmatmul.msk.f32.vlgmr.msra.gmra.mxu0 %vm198_vm1, %v771_v52 }
  0xd0   : > { %v584_v59 = vld [vmem:[#allocation2 + $0x71] sm:$0xff]  ;;  %v585_v61 = vld [vmem:[#allocation2 + $0x79] sm:$0xff]  ;;  %v503_v5 = vpop.f32.mrf.mxu2  ;;  %v741_v38 = vpop.f32.mrf.mxu0 }
  0xd1   : > { %v592_v62 = vadd.f32 %v584_v59, %v536_v55  ;;  %v593_v0 = vadd.f32 %v585_v61, %v537_v56  ;;  %v569_v10 = vsel %vm545_vm2, 0.0, %v503_v5  ;;  %v823_v39 = vpop.f32.mrf.mxu1 }
  0xd2   : > { %v607_v1 = vld [vmem:[#allocation2 + $0x67] sm:$0xff] }
  0xd3   : > { %600 = vst.msk [vmem:[#allocation2 + $0x71] sm:$0xff] %vm198_vm1, %v592_v62  ;;  %v615_v2 = vadd.f32 %v607_v1, %v567_v60  ;;  %v2260_v34 = vpop.f32.mrf.mxu3 }
  0xd4   : > { %601 = vst.msk [vmem:[#allocation2 + $0x79] sm:$0xff] %vm198_vm1, %v593_v0  ;;  %v772_v3 = vld [vmem:[#allocation2 + $0x58] sm:$0xff] }
  0xd5   : > { %623 = vst.msk [vmem:[#allocation2 + $0x67] sm:$0xff] %vm198_vm1, %v615_v2  ;;  %1562 = vmatmul.msk.f32.gmra.mxu2 %vm198_vm1, %v772_v3  ;;  %1576 = vmatmul.msk.f32.gmra.mxu3 %vm198_vm1, %v771_v52 }
  0xd6   : > { %1550 = vmatmul.msk.f32.gmra.mxu1 %vm198_vm1, %v772_v3  ;;  %1592 = vmatmul.msk.f32.gmra.mxu0 %vm198_vm1, %v772_v3 }
  0xd8   : > { %v744_v41 = vpop.f32.mrf.mxu0 }
  0xd9   : > { %v826_v42 = vpop.f32.mrf.mxu1  ;;  %v745_v20 = vadd.f32 %v744_v41, %v2255_v30 }
  0xda   : > { %v608_v11 = vld [vmem:[#allocation2 + $0x6f] sm:$0xff] }
  0xdb   : > { %v616_v12 = vadd.f32 %v608_v11, %v568_v9  ;;  %v609_v13 = vld [vmem:[#allocation2 + $0x77] sm:$0xff]  ;;  %v1125_v14 = vld [vmem:[#allocation2 + $0x80] sm:$0xff]  ;;  %v2264_v36 = vpop.f32.mrf.mxu3 }
  0xdc   : > { %v617_v15 = vadd.f32 %v609_v13, %v569_v10  ;;  %v859_v16 = vld [vmem:[#allocation2 + $0x60] sm:$0xff]  ;;  %v742_v13 = vadd.f32 %v741_v38, %v2250_v27 }
  0xdd   : > { %624 = vst.msk [vmem:[#allocation2 + $0x6f] sm:$0xff] %vm198_vm1, %v616_v12  ;;  %1563 = vmatmul.msk.f32.gmra.mxu2 %vm198_vm1, %v859_v16  ;;  %1577 = vmatmul.msk.f32.gmra.mxu3 %vm198_vm1, %v772_v3 }
  0xde   : > { %625 = vst.msk [vmem:[#allocation2 + $0x77] sm:$0xff] %vm198_vm1, %v617_v15  ;;  %1593 = vmatmul.msk.f32.gmra.mxu0 %vm198_vm1, %v859_v16  ;;  %1607 = vmatmul.msk.f32.vlgmr.msra.gmra.mxu1 %vm198_vm1, %v1125_v14 }
  0xe0   : > { %v747_v47 = vpop.f32.mrf.mxu0 }
  0xe1   : > { %v829_v48 = vpop.f32.mrf.mxu1  ;;  %v748_v27 = vadd.f32 %v747_v47, %v2260_v34 }
  0xe3   : > { %v2270_v63 = vpop.f32.mrf.mxu3  ;;  %v849_v34 = vadd.f32 %v829_v48, %v748_v27 }
  0xe4   : > { %v860_v19 = vld [vmem:[#allocation2 + $0x68] sm:$0xff] }
  0xe5   : > { %1564 = vmatmul.msk.f32.gmra.mxu2 %vm198_vm1, %v860_v19  ;;  %1578 = vmatmul.msk.f32.gmra.mxu3 %vm198_vm1, %v859_v16  ;;  %v861_v22 = vld [vmem:[#allocation2 + $0x70] sm:$0xff]  ;;  %v862_v24 = vld [vmem:[#allocation2 + $0x78] sm:$0xff]  ;;  %v847_v16 = vadd.f32 %v823_v39, %v742_v13 }
  0xe6   : > { %1594 = vmatmul.msk.f32.gmra.mxu0 %vm198_vm1, %v860_v19  ;;  %1608 = vmatmul.msk.f32.gmra.mxu1 %vm198_vm1, %v1126_v18 }
  0xe8   : > { %v750_v53 = vpop.f32.mrf.mxu0 }
  0xed   : > { %1565 = vmatmul.msk.f32.gmra.mxu2 %vm198_vm1, %v861_v22  ;;  %1579 = vmatmul.msk.f32.gmra.mxu3 %vm198_vm1, %v860_v19 }
  0xee   : > { %1595 = vmatmul.msk.f32.gmra.mxu0 %vm198_vm1, %v861_v22  ;;  %1609 = vmatmul.msk.f32.gmra.mxu1 %vm198_vm1, %v1127_v21 }
  0xf0   : > { %v2284_v57 = vpop.f32.mrf.mxu0 }
  0xf5   : > { %1566 = vmatmul.msk.f32.gmra.mxu2 %vm198_vm1, %v862_v24  ;;  %1580 = vmatmul.msk.f32.gmra.mxu3 %vm198_vm1, %v861_v22 }
  0xf6   : > { %1596 = vmatmul.msk.f32.gmra.mxu0 %vm198_vm1, %v862_v24  ;;  %1610 = vmatmul.msk.f32.gmra.mxu1 %vm198_vm1, %v1128_v23 }
  0xf8   : > { %v2288_v61 = vpop.f32.mrf.mxu0 }
  0xfd   : > { %1581 = vmatmul.msk.f32.gmra.mxu3 %vm198_vm1, %v862_v24  ;;  %1623 = vmatmul.msk.f32.vlgmr.msra.gmra.mxu2 %vm198_vm1, %v1129_v25  ;;  %v848_v24 = vadd.f32 %v826_v42, %v745_v20 }
  0xfe   : > { %1597 = vmatmul.msk.f32.gmra.mxu0 %vm198_vm1, %v1125_v14  ;;  %1611 = vmatmul.msk.f32.gmra.mxu1 %vm198_vm1, %v1129_v25 }
 0x100   : > { %v2296_v4 = vpop.f32.mrf.mxu0 }
 0x105   : > { %1582 = vmatmul.msk.f32.gmra.mxu3 %vm198_vm1, %v1125_v14  ;;  %1624 = vmatmul.msk.f32.gmra.mxu2 %vm198_vm1, %v1130_v26 }
 0x106   : > { %1612 = vmatmul.msk.f32.gmra.mxu1 %vm198_vm1, %v1130_v26  ;;  %1598 = vmatmul.msk.f32.gmra.mxu0 %vm198_vm1, %v1126_v18 }
 0x10d   : > { %1625 = vmatmul.msk.f32.gmra.mxu2 %vm198_vm1, %v1131_v28  ;;  %1639 = vmatmul.msk.f32.vlgmr.msra.gmra.mxu3 %vm198_vm1, %v1305_v29 }
 0x10e   : > { %1613 = vmatmul.msk.f32.gmra.mxu1 %vm198_vm1, %v1131_v28 }
 0x115   : > { %1626 = vmatmul.msk.f32.gmra.mxu2 %vm198_vm1, %v1132_v31  ;;  %1640 = vmatmul.msk.f32.gmra.mxu3 %vm198_vm1, %v1306_v32 }
 0x116   : > { %1614 = vmatmul.msk.f32.gmra.mxu1 %vm198_vm1, %v1132_v31 }
 0x11d   : > { %1627 = vmatmul.msk.f32.gmra.mxu2 %vm198_vm1, %v1305_v29  ;;  %1641 = vmatmul.msk.f32.gmra.mxu3 %vm198_vm1, %v1307_v33 }
 0x125   : > { %1628 = vmatmul.msk.f32.gmra.mxu2 %vm198_vm1, %v1306_v32  ;;  %1642 = vmatmul.msk.f32.gmra.mxu3 %vm198_vm1, %v1308_v35 }
 0x12d   : > { %1629 = vmatmul.msk.f32.gmra.mxu2 %vm198_vm1, %v1307_v33  ;;  %1643 = vmatmul.msk.f32.gmra.mxu3 %vm198_vm1, %v1309_v37  ;;  %v2320_v33 = vld [vmem:[%s2380_s3] ss:$0 sm:$0xff] }
 0x132   : > { %v2304_v8 = vpop.f32.mrf.mxu0 }
 0x133   : > { %v832_v52 = vpop.f32.mrf.mxu1 }
 0x135   : > { %1630 = vmatmul.msk.f32.gmra.mxu2 %vm198_vm1, %v1308_v35  ;;  %1644 = vmatmul.msk.f32.gmra.mxu3 %vm198_vm1, %v1310_v40 }
 0x138   : > { %v2274_v43 = vpop.f32.mrf.mxu3 }
 0x13b   : > { %v2282_v56 = vpop.f32.mrf.mxu1 }
 0x13d   : > { %1645 = vmatmul.msk.f32.gmra.mxu3 %vm198_vm1, %v1311_v44 }
 0x140   : > { %v2277_v45 = vpop.f32.mrf.mxu3  ;;  %v913_v46 = vpop.f32.mrf.mxu2 }
 0x141   : > { %v937_v17 = vadd.f32 %v913_v46, %v847_v16 }
 0x143   : > { %v2286_v60 = vpop.f32.mrf.mxu1 }
 0x145   : > { %1646 = vmatmul.msk.f32.gmra.mxu3 %vm198_vm1, %v1312_v49  ;;  %v751_v49 = vadd.f32 %v750_v53, %v2264_v36 }
 0x148   : > { %v2280_v50 = vpop.f32.mrf.mxu3  ;;  %v916_v51 = vpop.f32.mrf.mxu2 }
 0x149   : > { %v938_v26 = vadd.f32 %v916_v51, %v848_v24 }
 0x14b   : > { %v2292_v1 = vpop.f32.mrf.mxu1  ;;  %v1093_v11 = vpop.f32.mrf.mxu0 }
 0x150   : > { %v919_v54 = vpop.f32.mrf.mxu2  ;;  %v1003_v55 = vpop.f32.mrf.mxu3 }
 0x151   : > { %v1027_v21 = vadd.f32 %v1003_v55, %v937_v17  ;;  %v939_v41 = vadd.f32 %v919_v54, %v849_v34 }
 0x153   : > { %v2302_v7 = vpop.f32.mrf.mxu1  ;;  %v1096_v18 = vpop.f32.mrf.mxu0  ;;  %v1117_v25 = vadd.f32 %v1093_v11, %v1027_v21  ;;  %v850_v11 = vadd.f32 %v832_v52, %v751_v49 }
 0x158   : > { %v922_v58 = vpop.f32.mrf.mxu2  ;;  %v1006_v59 = vpop.f32.mrf.mxu3 }
 0x159   : > { %v1028_v29 = vadd.f32 %v1006_v59, %v938_v26 }
 0x15b   : > { %v1183_v12 = vpop.f32.mrf.mxu1  ;;  %v1099_v31 = vpop.f32.mrf.mxu0  ;;  %v1118_v39 = vadd.f32 %v1096_v18, %v1028_v29  ;;  %v754_v18 = vadd.f32 %v2284_v57, %v2270_v63  ;;  %v757_v63 = vadd.f32 %v2288_v61, %v2274_v43  ;;  %v760_v43 = vadd.f32 %v2296_v4, %v2277_v45 }
 0x15c   : > { %v1207_v28 = vadd.f32 %v1183_v12, %v1117_v25  ;;  %v763_v45 = vadd.f32 %v2304_v8, %v2280_v50 }
 0x15d   : > { %v851_v53 = vadd.f32 %v2282_v56, %v754_v18  ;;  %v852_v57 = vadd.f32 %v2286_v60, %v757_v63  ;;  %v853_v61 = vadd.f32 %v2292_v1, %v760_v43 }
 0x160   : > { %v2290_v62 = vpop.f32.mrf.mxu2  ;;  %v1009_v0 = vpop.f32.mrf.mxu3 }
 0x161   : > { %v1029_v44 = vadd.f32 %v1009_v0, %v939_v41 }
 0x163   : > { %v1186_v19 = vpop.f32.mrf.mxu1  ;;  %v1102_v51 = vpop.f32.mrf.mxu0  ;;  %v1119_v12 = vadd.f32 %v1099_v31, %v1029_v44 }
 0x164   : > { %v1208_v42 = vadd.f32 %v1186_v19, %v1118_v39 }
 0x168   : > { %v2294_v2 = vpop.f32.mrf.mxu2  ;;  %v1012_v3 = vpop.f32.mrf.mxu3 }
 0x169   : > { %v942_v29 = vadd.f32 %v2294_v2, %v852_v57 }
 0x16b   : > { %v1189_v30 = vpop.f32.mrf.mxu1  ;;  %v1105_v19 = vpop.f32.mrf.mxu0 }
 0x16c   : > { %v1209_v54 = vadd.f32 %v1189_v30, %v1119_v12 }
 0x170   : > { %v2298_v5 = vpop.f32.mrf.mxu2  ;;  %v2300_v6 = vpop.f32.mrf.mxu3 }
 0x171   : > { %v943_v34 = vadd.f32 %v2298_v5, %v853_v61 }
 0x173   : > { %v1192_v59 = vpop.f32.mrf.mxu1 }
 0x178   : > { %v2306_v9 = vpop.f32.mrf.mxu2  ;;  %v2308_v10 = vpop.f32.mrf.mxu3 }
 0x17b   : > { %v1195_v21 = vpop.f32.mrf.mxu1 }
 0x180   : > { %v2311_v14 = vpop.f32.mrf.mxu3  ;;  %v1273_v15 = vpop.f32.mrf.mxu2 }
 0x181   : > { %v1297_v32 = vadd.f32 %v1273_v15, %v1207_v28  ;;  %v940_v15 = vadd.f32 %v922_v58, %v850_v11  ;;  %v941_v58 = vadd.f32 %v2290_v62, %v851_v53  ;;  %v1108_v62 = vpop.f32.mrf.mxu0 }
 0x183   : > { %v1030_v16 = vadd.f32 %v1012_v3, %v940_v15  ;;  %v1031_v24 = vadd.f32 %v2300_v6, %v941_v58  ;;  %v1032_v6 = vadd.f32 %v2308_v10, %v942_v29  ;;  %v1033_v10 = vadd.f32 %v2311_v14, %v943_v34 }
 0x185   : > { %v1120_v52 = vadd.f32 %v1102_v51, %v1030_v16  ;;  %v1121_v28 = vadd.f32 %v1105_v19, %v1031_v24 }
 0x187   : > { %v1211_v31 = vadd.f32 %v1195_v21, %v1121_v28 }
 0x188   : > { %v2314_v22 = vpop.f32.mrf.mxu3  ;;  %v1276_v23 = vpop.f32.mrf.mxu2 }
 0x189   : > { %v1298_v46 = vadd.f32 %v1276_v23, %v1208_v42  ;;  %v1210_v23 = vadd.f32 %v1192_v59, %v1120_v52 }
 0x190   : > { %v1363_v35 = vpop.f32.mrf.mxu3  ;;  %v1279_v38 = vpop.f32.mrf.mxu2 }
 0x191   : > { %v1387_v37 = vadd.f32 %v1363_v35, %v1297_v32  ;;  %v1299_v17 = vadd.f32 %v1279_v38, %v1209_v54  ;;  %v1198_v32 = vpop.f32.mrf.mxu1  ;;  %v1122_v38 = vadd.f32 %v1108_v62, %v1032_v6 }
 0x193   : > { %v1399_v40 = vadd.f32 %v2320_v33, %v1387_v37  ;;  %v1212_v39 = vadd.f32 %v1198_v32, %v1122_v38 }
 0x195   : > { %1407 = vst.msk [vmem:[%s2327_s6] sm:$0xff] %vm198_vm1, %v1399_v40  ;;  %v1111_v40 = vpop.f32.mrf.mxu0 }
 0x198   : > { %v1366_v47 = vpop.f32.mrf.mxu3  ;;  %v1282_v13 = vpop.f32.mrf.mxu2 }
 0x199   : > { %v1388_v55 = vadd.f32 %v1366_v47, %v1298_v46  ;;  %v1300_v25 = vadd.f32 %v1282_v13, %v1210_v23  ;;  %v1201_v42 = vpop.f32.mrf.mxu1  ;;  %v854_v46 = vadd.f32 %v2302_v7, %v763_v45  ;;  %v1123_v47 = vadd.f32 %v1111_v40, %v1033_v10 }
 0x19b   : > { %v1400_v48 = vadd.f32 %v2320_v33, %v1388_v55  ;;  %v944_v49 = vadd.f32 %v2306_v9, %v854_v46  ;;  %v1213_v51 = vadd.f32 %v1201_v42, %v1123_v47 }
 0x19d   : > { %1408 = vst.msk [vmem:[%s2327_s6 + $0x8] sm:$0xff] %vm198_vm1, %v1400_v48  ;;  %v1034_v14 = vadd.f32 %v2314_v22, %v944_v49  ;;  %v1114_v59 = vpop.f32.mrf.mxu0 }
 0x19f   : > { %v1124_v12 = vadd.f32 %v1114_v59, %v1034_v14 }
 0x1a0   : > { %v1369_v0 = vpop.f32.mrf.mxu3  ;;  %v1285_v3 = vpop.f32.mrf.mxu2 }
 0x1a1   : > { %v1389_v36 = vadd.f32 %v1369_v0, %v1299_v17  ;;  %v1301_v30 = vadd.f32 %v1285_v3, %v1211_v31  ;;  %v1204_v8 = vpop.f32.mrf.mxu1 }
 0x1a2   : > { %v1214_v13 = vadd.f32 %v1204_v8, %v1124_v12 }
 0x1a3   : > { %v1401_v20 = vadd.f32 %v2320_v33, %v1389_v36 }
 0x1a5   : > { %1409 = vst.msk [vmem:[%s2327_s6 + $0x10] sm:$0xff] %vm198_vm1, %v1401_v20 }
 0x1a8   : > { %v1372_v26 = vpop.f32.mrf.mxu3  ;;  %v1288_v35 = vpop.f32.mrf.mxu2 }
 0x1a9   : > { %v1390_v56 = vadd.f32 %v1372_v26, %v1300_v25  ;;  %v1302_v41 = vadd.f32 %v1288_v35, %v1212_v39 }
 0x1ab   : > { %v1402_v27 = vadd.f32 %v2320_v33, %v1390_v56 }
 0x1ad   : > { %1410 = vst.msk [vmem:[%s2327_s6 + $0x18] sm:$0xff] %vm198_vm1, %v1402_v27 }
 0x1b0   : > { %v1375_v37 = vpop.f32.mrf.mxu3  ;;  %v1291_v1 = vpop.f32.mrf.mxu2 }
 0x1b1   : > { %v1391_v60 = vadd.f32 %v1375_v37, %v1301_v30  ;;  %v1303_v55 = vadd.f32 %v1291_v1, %v1213_v51 }
 0x1b3   : > { %v1403_v2 = vadd.f32 %v2320_v33, %v1391_v60 }
 0x1b5   : > { %1411 = vst.msk [vmem:[%s2327_s6 + $0x20] sm:$0xff] %vm198_vm1, %v1403_v2 }
 0x1b8   : > { %v1378_v44 = vpop.f32.mrf.mxu3  ;;  %v1294_v48 = vpop.f32.mrf.mxu2 }
 0x1b9   : > { %v1392_v4 = vadd.f32 %v1378_v44, %v1302_v41  ;;  %v1304_v15 = vadd.f32 %v1294_v48, %v1214_v13 }
 0x1bb   : > { %v1404_v5 = vadd.f32 %v2320_v33, %v1392_v4 }
 0x1bd   : > { %1412 = vst.msk [vmem:[%s2327_s6 + $0x28] sm:$0xff] %vm198_vm1, %v1404_v5 }
 0x1c0   : > { %v1381_v11 = vpop.f32.mrf.mxu3 }
 0x1c1   : > { %v1393_v50 = vadd.f32 %v1381_v11, %v1303_v55 }
 0x1c3   : > { %v1405_v7 = vadd.f32 %v2320_v33, %v1393_v50 }
 0x1c5   : > { %1413 = vst.msk [vmem:[%s2327_s6 + $0x30] sm:$0xff] %vm198_vm1, %v1405_v7 }
 0x1c8   : > { %v1384_v9 = vpop.f32.mrf.mxu3 }
 0x1c9   : > { %v1394_v54 = vadd.f32 %v1384_v9, %v1304_v15 }
 0x1cb   : > { %v1406_v16 = vadd.f32 %v2320_v33, %v1394_v54 }
 0x1cd   : > { %1414 = vst.msk [vmem:[%s2327_s6 + $0x38] sm:$0xff] %vm198_vm1, %v1406_v16 }
 0x1ce PF: > { %s14_s15 = sadd.s32 1, %s1667_s15  }
 0x1cf   : > { %p11_p4 = scmp.ge.s32.totalorder %s14_s15, 4  }
 0x1d1   :  { %13 = sbr.rel (!%p11_p4) target bundleno = 1 (0x1), region = 76 }

</bundles_post_ra>
